<compile_context>
chip_gen: v6e
topology: v6e:2x2x1
jax: 0.10.0
libtpu: 0.0.40
codegen_flags: <defaults>
</compile_context>

<pallas_src>
import functools

import jax
import jax.numpy as jnp
from jax.experimental import pallas as pl
from jax.experimental.pallas import tpu as pltpu

LEAKY_SLOPE = 0.2
SEQ_DIM, EPI_DIM = 4, 10
C_IN = SEQ_DIM + EPI_DIM        # 14
BLK = 8                         # rows per sample block (one stride-2 phase)
LANES = 128                     # layer-1 im2col patch (3*14=42) zero-padded to 128


# ---------------------------------------------------------------------------
# In-kernel helpers (values in vregs; channels on lanes)
# ---------------------------------------------------------------------------
def _lrelu(v):
    return jnp.maximum(v, LEAKY_SLOPE * v)      # single VPU max


def _up(x, k):
    """Rows shifted up by k: out[i] = x[i + k] (wrap).

    Wrapped rows only land in per-sample padding rows, which are never read when
    producing a valid output row, so the wrap-around is harmless.
    """
    return pltpu.roll(x, shift=(-k) % x.shape[0], axis=0)


def _maxpool3_pad1_s1(x, l_valid):
    """MaxPool1d(kernel=3, stride=1, padding=1), applied per BLK-row sample block."""
    rows = jax.lax.broadcasted_iota(jnp.int32, (x.shape[0], 1), 0)
    jpos = rows & (BLK - 1)                                    # position inside block
    nxt = jnp.where(jpos == (l_valid - 1), -jnp.inf, _up(x, 1))        # right -inf pad
    prv = jnp.where(jpos == 0, -jnp.inf, pltpu.roll(x, shift=1, axis=0))  # left pad
    return jnp.maximum(x, jnp.maximum(nxt, prv))


# ---------------------------------------------------------------------------
# Fused kernel: shared encoder (both streams, both stride phases) + conjoined head
# ---------------------------------------------------------------------------
def _conjoined_kernel(x1_ref, w1_ref, b1_ref, w2_ref, b2_ref, w3_ref, b3_ref,
                      wc1_ref, bc1_ref, wc2_ref, bc2_ref, wl_ref, bl_ref, sel_ref,
                      out_ref, *, pairs, l3, regression):
    f32, bf16 = jnp.float32, jnp.bfloat16
    half = pairs * BLK            # rows of one stream (target or grna) per phase
    rphase = 2 * half             # rows of one stride-2 phase (target + grna)

    def mm(x, w_ref):             # bf16 MXU matmul, f32 accumulation
        return jnp.dot(x.astype(bf16), w_ref[...], preferred_element_type=f32)

    # ---- EncodeLayer1: Conv1d(14->64, k=3, s=2), im2col'd in the wrapper; even/odd
    #      stride phases are separate 8-row blocks.  BatchNorm1d(14) (running stats)
    #      and GaussianNoise/Dropout (identity in eval) are folded into w1/b1.
    h1 = _lrelu(mm(x1_ref[...], w1_ref) + b1_ref[...])        # (2*rphase, 64)
    h1e, h1o = h1[:rphase], h1[rphase:]

    # ---- EncodeLayer2: Conv1d(64->128, k=3, s=1) + LeakyReLU, taps fused (K=192):
    #      even outputs read (h1[2j], h1[2j+1], h1[2j+2]) = (h1e[j], h1o[j], h1e[j+1])
    #      odd  outputs read (h1o[j], h1e[j+1], h1o[j+1])
    h1e_n = _up(h1e, 1)
    x2 = jnp.concatenate(
        [jnp.concatenate([h1e, h1o, h1e_n], axis=1),
         jnp.concatenate([h1o, h1e_n, _up(h1o, 1)], axis=1)], axis=0)
    h2 = _lrelu(mm(x2, w2_ref) + b2_ref[...])                  # (2*rphase, 128)
    h2e, h2o = h2[:rphase], h2[rphase:]

    # ---- EncodeLayer3: Conv1d(128->128, k=3, s=2) as a polyphase conv (only the
    #      even outputs are computed), taps fused (K=384); BN1d(128) folded in.
    x3 = jnp.concatenate([h2e, h2o, _up(h2e, 1)], axis=1)      # (rphase, 384)
    h3 = _lrelu(mm(x3, w3_ref) + b3_ref[...])                  # (rphase, 128)

    # ---- pair target/grna encodings on the lane axis (torch.cat along channels)
    conj = jnp.concatenate([h3[:half], h3[half:]], axis=1)     # (pairs*BLK, 256)

    # ---- conjoinedLayer1: Conv1d(256->256, k=3) + MaxPool1d(3,1,1) + ReLU  (K=768)
    xc1 = jnp.concatenate([conj, _up(conj, 1), _up(conj, 2)], axis=1)
    c1 = mm(xc1, wc1_ref) + bc1_ref[...]
    c1 = jnp.maximum(_maxpool3_pad1_s1(c1, l3 - 2), 0.0)

    # ---- conjoinedLayer2: Conv1d(256->512, k=2) + MaxPool1d(3,1,1) + ReLU  (K=512)
    xc2 = jnp.concatenate([c1, _up(c1, 1)], axis=1)
    c2 = mm(xc2, wc2_ref) + bc2_ref[...]
    c2 = jnp.maximum(_maxpool3_pad1_s1(c2, l3 - 3), 0.0)       # valid length 1 / pair

    # ---- reshape(B,-1) + Linear(512,1): shared 0/1 selection matmul gathers
    #      block-row 0 of every pair, then a VPU multiply + lane reduction.
    rows0 = jnp.dot(sel_ref[...], c2, preferred_element_type=f32)   # (pairs, 512)
    val = jnp.sum(rows0 * wl_ref[...], axis=1, keepdims=True) + bl_ref[...]
    if not regression:
        val = jax.nn.sigmoid(val)
    out_ref[...] = val


# ---------------------------------------------------------------------------
# Glue: BN folding, tap fusion, phase-split im2col, grid/BlockSpec wrapper
# ---------------------------------------------------------------------------
def _fold_bn(gamma, beta, mean, var, eps=1e-5):
    s = gamma / jnp.sqrt(var + eps)
    return s, beta - mean * s


def _cat_taps(w):
    """torch Conv1d weight (Cout, Cin, K) -> tap-fused (K*Cin, Cout) matmul operand."""
    cout, cin, k = w.shape
    return jnp.transpose(w, (2, 1, 0)).reshape(k * cin, cout)


def _pick_pairs_per_block(n_pairs):
    if n_pairs <= 64:
        return n_pairs
    for pb in (64, 56, 48, 40, 32, 24, 16, 8):
        if n_pairs % pb == 0:
            return pb
    return n_pairs                     # fall back to a single (large) block


@functools.partial(jax.jit, static_argnames=("regression", "pairs_per_block"))
def conjoined_forward(x_target, x_grna, params, regression=False, pairs_per_block=None):
    B, C, L = x_target.shape
    assert C == C_IN
    # PyTorch Conv1d length arithmetic (padding=0)
    l1 = (L - 3) // 2 + 1              # EncodeLayer1 (k=3, s=2)
    l2 = l1 - 2                        # EncodeLayer2 (k=3, s=1)
    l3 = (l2 - 3) // 2 + 1             # EncodeLayer3 (k=3, s=2)
    assert l3 - 3 == 1, "conjoinedLinear(512,1) requires final conjoined length 1 (L=25)"
    n_even, n_odd = (l1 + 1) // 2, l1 // 2
    assert max(n_even, n_odd, l3) <= BLK

    PB = _pick_pairs_per_block(B) if pairs_per_block is None else pairs_per_block
    assert B % PB == 0 and (PB == B or PB % 8 == 0)
    G = B // PB
    RPB = 4 * PB * BLK                 # rows per grid block: {even,odd} x {target,grna}

    # ---- layer-1 im2col with the stride-2 phase split done in the wrapper ---------
    x_all = jnp.concatenate([x_target, x_grna], axis=0).astype(jnp.float32)  # (2B,14,L)
    pos = 2 * jnp.arange(l1)[:, None] + jnp.arange(3)[None, :]               # (l1, 3)
    patches = jnp.transpose(x_all[:, :, pos], (0, 2, 3, 1)).reshape(2 * B, l1, 3 * C_IN)

    def phase(p):                       # (2B, n, 42) -> (2B, BLK, 128) zero padded
        return jnp.pad(p, ((0, 0), (0, BLK - p.shape[1]), (0, LANES - 3 * C_IN)))

    pe, po = phase(patches[:, 0::2, :]), phase(patches[:, 1::2, :])
    blk = lambda p: p.reshape(G, PB * BLK, LANES)
    X1 = jnp.concatenate([blk(pe[:B]), blk(pe[B:]), blk(po[:B]), blk(po[B:])], axis=1)
    X1 = X1.reshape(G * RPB, LANES).astype(jnp.bfloat16)

    # ---- fold eval-mode BatchNorms into the adjacent convs, fuse taps, cast bf16 --
    s1, t1 = _fold_bn(params["bn1_g"], params["bn1_b"], params["bn1_m"], params["bn1_v"])
    s3, t3 = _fold_bn(params["bn3_g"], params["bn3_b"], params["bn3_m"], params["bn3_v"])

    w1 = params["w1"] * s1[None, :, None]
    b1 = params["b1"] + jnp.sum(params["w1"] * t1[None, :, None], axis=(1, 2))
    w1f = jnp.pad(_cat_taps(w1), ((0, LANES - 3 * C_IN), (0, 0))).astype(jnp.bfloat16)

    w2c = _cat_taps(params["w2"]).astype(jnp.bfloat16)                       # (192,128)
    w3c = _cat_taps(params["w3"] * s3[:, None, None]).astype(jnp.bfloat16)   # (384,128)
    b3 = params["b3"] * s3 + t3
    wc1c = _cat_taps(params["wc1"]).astype(jnp.bfloat16)                     # (768,256)
    wc2c = _cat_taps(params["wc2"]).astype(jnp.bfloat16)                     # (512,512)

    # row-0-of-block gather for the final Linear: O(PB^2), shared by every grid step
    sel = (jnp.arange(PB * BLK)[None, :] == (BLK * jnp.arange(PB))[:, None]
           ).astype(jnp.float32)                                             # (PB, PB*8)

    row = lambda v: v.reshape(1, -1).astype(jnp.float32)
    args = (X1, w1f, row(b1),
            w2c, row(params["b2"]),
            w3c, row(b3),
            wc1c, row(params["bc1"]),
            wc2c, row(params["bc2"]),
            row(params["wl"]), row(params["bl"]), sel)

    resident = lambda a: pl.BlockSpec(a.shape, lambda g: (0, 0))   # weights: VMEM resident
    in_specs = ([pl.BlockSpec((RPB, LANES), lambda g: (g, 0))]
                + [resident(a) for a in args[1:]])

    return pl.pallas_call(
        functools.partial(_conjoined_kernel, pairs=PB, l3=l3, regression=regression),
        out_shape=jax.ShapeDtypeStruct((B, 1), jnp.float32),
        grid=(G,),
        in_specs=in_specs,
        out_specs=pl.BlockSpec((PB, 1), lambda g: (g, 0)),
        compiler_params=pltpu.CompilerParams(
            dimension_semantics=("parallel",),
            vmem_limit_bytes=48 * 1024 * 1024),
    )(*args)


# ---------------------------------------------------------------------------
# Parameters (torch layout) and a pure-JAX reference for verification
# ---------------------------------------------------------------------------
def init_params(key):
    ks = jax.random.split(key, 20)

    def w(k, shape, scale=0.1):
        return scale * jax.random.normal(k, shape, jnp.float32)

    p = {}
    p["bn1_g"] = 0.5 + jax.random.uniform(ks[0], (C_IN,), jnp.float32)
    p["bn1_b"] = 0.1 * jax.random.normal(ks[1], (C_IN,), jnp.float32)
    p["bn1_m"] = 0.1 * jax.random.normal(ks[2], (C_IN,), jnp.float32)
    p["bn1_v"] = 0.5 + jax.random.uniform(ks[3], (C_IN,), jnp.float32)
    p["w1"] = w(ks[4], (64, C_IN, 3));        p["b1"] = w(ks[5], (64,))
    p["w2"] = w(ks[6], (128, 64, 3));         p["b2"] = w(ks[7], (128,))
    p["w3"] = w(ks[8], (128, 128, 3));        p["b3"] = w(ks[9], (128,))
    p["bn3_g"] = 0.5 + jax.random.uniform(ks[10], (128,), jnp.float32)
    p["bn3_b"] = 0.1 * jax.random.normal(ks[11], (128,), jnp.float32)
    p["bn3_m"] = 0.1 * jax.random.normal(ks[12], (128,), jnp.float32)
    p["bn3_v"] = 0.5 + jax.random.uniform(ks[13], (128,), jnp.float32)
    p["wc1"] = w(ks[14], (256, 256, 3), 0.05); p["bc1"] = w(ks[15], (256,))
    p["wc2"] = w(ks[16], (512, 256, 2), 0.05); p["bc2"] = w(ks[17], (512,))
    p["wl"] = w(ks[18], (1, 512));            p["bl"] = w(ks[19], (1,))
    return p


def reference_forward(x_target, x_grna, params, regression=False):
    """Pure-JAX (non-Pallas) eval-mode forward, used only to verify the kernel."""
    def bn(x, g, b, m, v, eps=1e-5):
        s = g / jnp.sqrt(v + eps)
        return x * s[None, :, None] + (b - m * s)[None, :, None]

    def conv1d(x, w, b, stride):
        y = jax.lax.conv_general_dilated(
            x, w, (stride,), "VALID",
            dimension_numbers=("NCW", "OIW", "NCW"),
            precision=jax.lax.Precision.HIGHEST)
        return y + b[None, :, None]

    def maxpool3(x):
        neg = jnp.full(x.shape[:2] + (1,), -jnp.inf, x.dtype)
        xp = jnp.concatenate([neg, x, neg], axis=2)
        return jnp.maximum(jnp.maximum(xp[:, :, :-2], xp[:, :, 1:-1]), xp[:, :, 2:])

    lrelu = lambda v: jnp.where(v >= 0, v, LEAKY_SLOPE * v)

    def encode(x):
        x = bn(x, params["bn1_g"], params["bn1_b"], params["bn1_m"], params["bn1_v"])
        h = lrelu(conv1d(x, params["w1"], params["b1"], 2))
        h = lrelu(conv1d(h, params["w2"], params["b2"], 1))
        h = conv1d(h, params["w3"], params["b3"], 2)
        return lrelu(bn(h, params["bn3_g"], params["bn3_b"],
                        params["bn3_m"], params["bn3_v"]))

    xt = x_target.astype(jnp.float32)
    xg = x_grna.astype(jnp.float32)
    x = jnp.concatenate([encode(xt), encode(xg)], axis=1)
    c = jnp.maximum(maxpool3(conv1d(x, params["wc1"], params["bc1"], 1)), 0.0)
    c = jnp.maximum(maxpool3(conv1d(c, params["wc2"], params["bc2"], 1)), 0.0)
    out = c.reshape(c.shape[0], -1) @ params["wl"].T + params["bl"][None, :]
    return out if regression else jax.nn.sigmoid(out)


if __name__ == "__main__":
    key = jax.random.PRNGKey(0)
    k_xt, k_xg, k_par = jax.random.split(key, 3)

    B, L = 2, 25  # L=25 -> final conjoined spatial length 1, as Linear(512,1) requires
    x_target = jax.random.normal(k_xt, (B, C_IN, L), jnp.float32)
    x_grna = jax.random.normal(k_xg, (B, C_IN, L), jnp.float32)
    params = init_params(k_par)

    out = jax.block_until_ready(
        conjoined_forward(x_target, x_grna, params, regression=False))
    assert out.shape == (B, 1)
    assert bool(jnp.all(jnp.isfinite(out)))

    # Verify against the plain-JAX (f32 HIGHEST) reference; tolerance covers the
    # bf16 MXU operands (accumulation is f32).
    ref = reference_forward(x_target, x_grna, params, regression=False)
    assert bool(jnp.allclose(out, ref, atol=2e-2, rtol=2e-2)), (out, ref)

    out_reg = jax.block_until_ready(
        conjoined_forward(x_target, x_grna, params, regression=True))
    ref_reg = reference_forward(x_target, x_grna, params, regression=True)
    assert bool(jnp.allclose(out_reg, ref_reg, atol=2e-2, rtol=2e-2)), (out_reg, ref_reg)

    print("KERNEL_OK")
</pallas_src>

<mosaic_0001>
module attributes {stable_mosaic.version = 11 : i64} {
  func.func @_conjoined_kernel(%arg0: i32, %arg1: memref<64x128xbf16, #tpu.memory_space<vmem>>, %arg2: memref<128x64xbf16, #tpu.memory_space<vmem>>, %arg3: memref<1x64xf32, #tpu.memory_space<vmem>>, %arg4: memref<192x128xbf16, #tpu.memory_space<vmem>>, %arg5: memref<1x128xf32, #tpu.memory_space<vmem>>, %arg6: memref<384x128xbf16, #tpu.memory_space<vmem>>, %arg7: memref<1x128xf32, #tpu.memory_space<vmem>>, %arg8: memref<768x256xbf16, #tpu.memory_space<vmem>>, %arg9: memref<1x256xf32, #tpu.memory_space<vmem>>, %arg10: memref<512x512xbf16, #tpu.memory_space<vmem>>, %arg11: memref<1x512xf32, #tpu.memory_space<vmem>>, %arg12: memref<1x512xf32, #tpu.memory_space<vmem>>, %arg13: memref<1x1xf32, #tpu.memory_space<vmem>>, %arg14: memref<2x16xf32, #tpu.memory_space<vmem>>, %arg15: memref<2x1xf32, #tpu.memory_space<vmem>>) attributes {dimension_semantics = [#tpu.dimension_semantics<parallel>], iteration_bounds = array<i64: 1>, scalar_prefetch = 0 : i64, scratch_operands = 0 : i64, tpu.core_type = #tpu.core_type<tc>, window_params = [{transform_indices = @transform_0, window_bounds = array<i64: 64, 128>}, {pipeline_mode = #tpu.pipeline_mode<synchronous>, transform_indices = @transform_1, window_bounds = array<i64: 128, 64>}, {pipeline_mode = #tpu.pipeline_mode<synchronous>, transform_indices = @transform_2, window_bounds = array<i64: 1, 64>}, {pipeline_mode = #tpu.pipeline_mode<synchronous>, transform_indices = @transform_3, window_bounds = array<i64: 192, 128>}, {pipeline_mode = #tpu.pipeline_mode<synchronous>, transform_indices = @transform_4, window_bounds = array<i64: 1, 128>}, {pipeline_mode = #tpu.pipeline_mode<synchronous>, transform_indices = @transform_5, window_bounds = array<i64: 384, 128>}, {pipeline_mode = #tpu.pipeline_mode<synchronous>, transform_indices = @transform_6, window_bounds = array<i64: 1, 128>}, {pipeline_mode = #tpu.pipeline_mode<synchronous>, transform_indices = @transform_7, window_bounds = array<i64: 768, 256>}, {pipeline_mode = #tpu.pipeline_mode<synchronous>, transform_indices = @transform_8, window_bounds = array<i64: 1, 256>}, {pipeline_mode = #tpu.pipeline_mode<synchronous>, transform_indices = @transform_9, window_bounds = array<i64: 512, 512>}, {pipeline_mode = #tpu.pipeline_mode<synchronous>, transform_indices = @transform_10, window_bounds = array<i64: 1, 512>}, {pipeline_mode = #tpu.pipeline_mode<synchronous>, transform_indices = @transform_11, window_bounds = array<i64: 1, 512>}, {pipeline_mode = #tpu.pipeline_mode<synchronous>, transform_indices = @transform_12, window_bounds = array<i64: 1, 1>}, {pipeline_mode = #tpu.pipeline_mode<synchronous>, transform_indices = @transform_13, window_bounds = array<i64: 2, 16>}, {transform_indices = @transform_14, window_bounds = array<i64: 2, 1>}]} {
    %c0 = arith.constant 0 : index
    %c0_0 = arith.constant 0 : index
    %0 = vector.load %arg1[%c0, %c0_0] : memref<64x128xbf16, #tpu.memory_space<vmem>>, vector<64x128xbf16>
    %c0_1 = arith.constant 0 : index
    %c0_2 = arith.constant 0 : index
    %1 = vector.load %arg2[%c0_1, %c0_2] : memref<128x64xbf16, #tpu.memory_space<vmem>>, vector<128x64xbf16>
    %cst = arith.constant dense<0.000000e+00> : vector<64x64xf32>
    %2 = tpu.matmul %0, %1, %cst {dimension_numbers = #tpu.dot_dimension_numbers<[1], [0], [0], [1], [0, 0, 1, 1], [], []>} : vector<64x128xbf16>, vector<128x64xbf16>, vector<64x64xf32> -> vector<64x64xf32>
    %c0_3 = arith.constant 0 : index
    %c0_4 = arith.constant 0 : index
    %3 = vector.load %arg3[%c0_3, %c0_4] : memref<1x64xf32, #tpu.memory_space<vmem>>, vector<1x64xf32>
    %4 = vector.broadcast %3 : vector<1x64xf32> to vector<64x64xf32>
    %5 = arith.addf %2, %4 : vector<64x64xf32>
    %cst_5 = arith.constant 2.000000e-01 : f32
    %6 = vector.broadcast %cst_5 : f32 to vector<64x64xf32>
    %7 = arith.mulf %6, %5 : vector<64x64xf32>
    %8 = arith.maximumf %5, %7 : vector<64x64xf32>
    %9 = vector.extract_strided_slice %8 {offsets = [0, 0], sizes = [32, 64], strides = [1, 1]} : vector<64x64xf32> to vector<32x64xf32>
    %10 = vector.extract_strided_slice %8 {offsets = [32, 0], sizes = [32, 64], strides = [1, 1]} : vector<64x64xf32> to vector<32x64xf32>
    %c31_i32 = arith.constant 31 : i32
    %11 = tpu.dynamic_rotate %9 by %c31_i32 dim 0 : vector<32x64xf32>, i32 -> vector<32x64xf32>
    %12 = tpu.concatenate %9, %10, %11 in 1 : vector<32x64xf32>, vector<32x64xf32>, vector<32x64xf32> -> vector<32x192xf32>
    %c31_i32_6 = arith.constant 31 : i32
    %13 = tpu.dynamic_rotate %10 by %c31_i32_6 dim 0 : vector<32x64xf32>, i32 -> vector<32x64xf32>
    %14 = tpu.concatenate %10, %11, %13 in 1 : vector<32x64xf32>, vector<32x64xf32>, vector<32x64xf32> -> vector<32x192xf32>
    %15 = tpu.concatenate %12, %14 in 0 : vector<32x192xf32>, vector<32x192xf32> -> vector<64x192xf32>
    %16 = arith.truncf %15 : vector<64x192xf32> to vector<64x192xbf16>
    %c0_7 = arith.constant 0 : index
    %c0_8 = arith.constant 0 : index
    %17 = vector.load %arg4[%c0_7, %c0_8] : memref<192x128xbf16, #tpu.memory_space<vmem>>, vector<192x128xbf16>
    %cst_9 = arith.constant dense<0.000000e+00> : vector<64x128xf32>
    %18 = tpu.matmul %16, %17, %cst_9 {dimension_numbers = #tpu.dot_dimension_numbers<[1], [0], [0], [1], [0, 0, 1, 1], [], []>} : vector<64x192xbf16>, vector<192x128xbf16>, vector<64x128xf32> -> vector<64x128xf32>
    %c0_10 = arith.constant 0 : index
    %c0_11 = arith.constant 0 : index
    %19 = vector.load %arg5[%c0_10, %c0_11] : memref<1x128xf32, #tpu.memory_space<vmem>>, vector<1x128xf32>
    %20 = vector.broadcast %19 : vector<1x128xf32> to vector<64x128xf32>
    %21 = arith.addf %18, %20 : vector<64x128xf32>
    %cst_12 = arith.constant 2.000000e-01 : f32
    %22 = vector.broadcast %cst_12 : f32 to vector<64x128xf32>
    %23 = arith.mulf %22, %21 : vector<64x128xf32>
    %24 = arith.maximumf %21, %23 : vector<64x128xf32>
    %25 = vector.extract_strided_slice %24 {offsets = [0, 0], sizes = [32, 128], strides = [1, 1]} : vector<64x128xf32> to vector<32x128xf32>
    %26 = vector.extract_strided_slice %24 {offsets = [32, 0], sizes = [32, 128], strides = [1, 1]} : vector<64x128xf32> to vector<32x128xf32>
    %c31_i32_13 = arith.constant 31 : i32
    %27 = tpu.dynamic_rotate %25 by %c31_i32_13 dim 0 : vector<32x128xf32>, i32 -> vector<32x128xf32>
    %28 = tpu.concatenate %25, %26, %27 in 1 : vector<32x128xf32>, vector<32x128xf32>, vector<32x128xf32> -> vector<32x384xf32>
    %29 = arith.truncf %28 : vector<32x384xf32> to vector<32x384xbf16>
    %c0_14 = arith.constant 0 : index
    %c0_15 = arith.constant 0 : index
    %30 = vector.load %arg6[%c0_14, %c0_15] : memref<384x128xbf16, #tpu.memory_space<vmem>>, vector<384x128xbf16>
    %cst_16 = arith.constant dense<0.000000e+00> : vector<32x128xf32>
    %31 = tpu.matmul %29, %30, %cst_16 {dimension_numbers = #tpu.dot_dimension_numbers<[1], [0], [0], [1], [0, 0, 1, 1], [], []>} : vector<32x384xbf16>, vector<384x128xbf16>, vector<32x128xf32> -> vector<32x128xf32>
    %c0_17 = arith.constant 0 : index
    %c0_18 = arith.constant 0 : index
    %32 = vector.load %arg7[%c0_17, %c0_18] : memref<1x128xf32, #tpu.memory_space<vmem>>, vector<1x128xf32>
    %33 = vector.broadcast %32 : vector<1x128xf32> to vector<32x128xf32>
    %34 = arith.addf %31, %33 : vector<32x128xf32>
    %cst_19 = arith.constant 2.000000e-01 : f32
    %35 = vector.broadcast %cst_19 : f32 to vector<32x128xf32>
    %36 = arith.mulf %35, %34 : vector<32x128xf32>
    %37 = arith.maximumf %34, %36 : vector<32x128xf32>
    %38 = vector.extract_strided_slice %37 {offsets = [0, 0], sizes = [16, 128], strides = [1, 1]} : vector<32x128xf32> to vector<16x128xf32>
    %39 = vector.extract_strided_slice %37 {offsets = [16, 0], sizes = [16, 128], strides = [1, 1]} : vector<32x128xf32> to vector<16x128xf32>
    %40 = tpu.concatenate %38, %39 in 1 : vector<16x128xf32>, vector<16x128xf32> -> vector<16x256xf32>
    %c15_i32 = arith.constant 15 : i32
    %41 = tpu.dynamic_rotate %40 by %c15_i32 dim 0 : vector<16x256xf32>, i32 -> vector<16x256xf32>
    %c14_i32 = arith.constant 14 : i32
    %42 = tpu.dynamic_rotate %40 by %c14_i32 dim 0 : vector<16x256xf32>, i32 -> vector<16x256xf32>
    %43 = tpu.concatenate %40, %41, %42 in 1 : vector<16x256xf32>, vector<16x256xf32>, vector<16x256xf32> -> vector<16x768xf32>
    %44 = arith.truncf %43 : vector<16x768xf32> to vector<16x768xbf16>
    %c0_20 = arith.constant 0 : index
    %c0_21 = arith.constant 0 : index
    %45 = vector.load %arg8[%c0_20, %c0_21] : memref<768x256xbf16, #tpu.memory_space<vmem>>, vector<768x256xbf16>
    %cst_22 = arith.constant dense<0.000000e+00> : vector<16x256xf32>
    %46 = tpu.matmul %44, %45, %cst_22 {dimension_numbers = #tpu.dot_dimension_numbers<[1], [0], [0], [1], [0, 0, 1, 1], [], []>} : vector<16x768xbf16>, vector<768x256xbf16>, vector<16x256xf32> -> vector<16x256xf32>
    %c0_23 = arith.constant 0 : index
    %c0_24 = arith.constant 0 : index
    %47 = vector.load %arg9[%c0_23, %c0_24] : memref<1x256xf32, #tpu.memory_space<vmem>>, vector<1x256xf32>
    %48 = vector.broadcast %47 : vector<1x256xf32> to vector<16x256xf32>
    %49 = arith.addf %46, %48 : vector<16x256xf32>
    %50 = tpu.iota {dimensions = array<i32: 0>} : vector<16x1xi32>
    %c7_i32 = arith.constant 7 : i32
    %51 = vector.broadcast %c7_i32 : i32 to vector<16x1xi32>
    %52 = arith.andi %50, %51 : vector<16x1xi32>
    %c1_i32 = arith.constant 1 : i32
    %53 = vector.broadcast %c1_i32 : i32 to vector<16x1xi32>
    %54 = arith.cmpi eq, %52, %53 : vector<16x1xi32>
    %c15_i32_25 = arith.constant 15 : i32
    %55 = tpu.dynamic_rotate %49 by %c15_i32_25 dim 0 : vector<16x256xf32>, i32 -> vector<16x256xf32>
    %cst_26 = arith.constant 0xFF800000 : f32
    %56 = vector.shape_cast %54 : vector<16x1xi1> to vector<16x1xi1>
    %57 = vector.broadcast %56 : vector<16x1xi1> to vector<16x256xi1>
    %58 = vector.broadcast %cst_26 : f32 to vector<16x256xf32>
    %59 = arith.select %57, %58, %55 : vector<16x256xi1>, vector<16x256xf32>
    %c0_i32 = arith.constant 0 : i32
    %60 = vector.broadcast %c0_i32 : i32 to vector<16x1xi32>
    %61 = arith.cmpi eq, %52, %60 : vector<16x1xi32>
    %c1_i32_27 = arith.constant 1 : i32
    %62 = tpu.dynamic_rotate %49 by %c1_i32_27 dim 0 : vector<16x256xf32>, i32 -> vector<16x256xf32>
    %cst_28 = arith.constant 0xFF800000 : f32
    %63 = vector.shape_cast %61 : vector<16x1xi1> to vector<16x1xi1>
    %64 = vector.broadcast %63 : vector<16x1xi1> to vector<16x256xi1>
    %65 = vector.broadcast %cst_28 : f32 to vector<16x256xf32>
    %66 = arith.select %64, %65, %62 : vector<16x256xi1>, vector<16x256xf32>
    %67 = arith.maximumf %59, %66 : vector<16x256xf32>
    %68 = arith.maximumf %49, %67 : vector<16x256xf32>
    %cst_29 = arith.constant 0.000000e+00 : f32
    %69 = vector.broadcast %cst_29 : f32 to vector<16x256xf32>
    %70 = arith.maximumf %68, %69 : vector<16x256xf32>
    %c15_i32_30 = arith.constant 15 : i32
    %71 = tpu.dynamic_rotate %70 by %c15_i32_30 dim 0 : vector<16x256xf32>, i32 -> vector<16x256xf32>
    %72 = tpu.concatenate %70, %71 in 1 : vector<16x256xf32>, vector<16x256xf32> -> vector<16x512xf32>
    %73 = arith.truncf %72 : vector<16x512xf32> to vector<16x512xbf16>
    %c0_31 = arith.constant 0 : index
    %c0_32 = arith.constant 0 : index
    %74 = vector.load %arg10[%c0_31, %c0_32] : memref<512x512xbf16, #tpu.memory_space<vmem>>, vector<512x512xbf16>
    %cst_33 = arith.constant dense<0.000000e+00> : vector<16x512xf32>
    %75 = tpu.matmul %73, %74, %cst_33 {dimension_numbers = #tpu.dot_dimension_numbers<[1], [0], [0], [1], [0, 0, 1, 1], [], []>} : vector<16x512xbf16>, vector<512x512xbf16>, vector<16x512xf32> -> vector<16x512xf32>
    %c0_34 = arith.constant 0 : index
    %c0_35 = arith.constant 0 : index
    %76 = vector.load %arg11[%c0_34, %c0_35] : memref<1x512xf32, #tpu.memory_space<vmem>>, vector<1x512xf32>
    %77 = vector.broadcast %76 : vector<1x512xf32> to vector<16x512xf32>
    %78 = arith.addf %75, %77 : vector<16x512xf32>
    %79 = tpu.iota {dimensions = array<i32: 0>} : vector<16x1xi32>
    %c7_i32_36 = arith.constant 7 : i32
    %80 = vector.broadcast %c7_i32_36 : i32 to vector<16x1xi32>
    %81 = arith.andi %79, %80 : vector<16x1xi32>
    %c0_i32_37 = arith.constant 0 : i32
    %82 = vector.broadcast %c0_i32_37 : i32 to vector<16x1xi32>
    %83 = arith.cmpi eq, %81, %82 : vector<16x1xi32>
    %c15_i32_38 = arith.constant 15 : i32
    %84 = tpu.dynamic_rotate %78 by %c15_i32_38 dim 0 : vector<16x512xf32>, i32 -> vector<16x512xf32>
    %cst_39 = arith.constant 0xFF800000 : f32
    %85 = vector.shape_cast %83 : vector<16x1xi1> to vector<16x1xi1>
    %86 = vector.broadcast %85 : vector<16x1xi1> to vector<16x512xi1>
    %87 = vector.broadcast %cst_39 : f32 to vector<16x512xf32>
    %88 = arith.select %86, %87, %84 : vector<16x512xi1>, vector<16x512xf32>
    %c0_i32_40 = arith.constant 0 : i32
    %89 = vector.broadcast %c0_i32_40 : i32 to vector<16x1xi32>
    %90 = arith.cmpi eq, %81, %89 : vector<16x1xi32>
    %c1_i32_41 = arith.constant 1 : i32
    %91 = tpu.dynamic_rotate %78 by %c1_i32_41 dim 0 : vector<16x512xf32>, i32 -> vector<16x512xf32>
    %cst_42 = arith.constant 0xFF800000 : f32
    %92 = vector.shape_cast %90 : vector<16x1xi1> to vector<16x1xi1>
    %93 = vector.broadcast %92 : vector<16x1xi1> to vector<16x512xi1>
    %94 = vector.broadcast %cst_42 : f32 to vector<16x512xf32>
    %95 = arith.select %93, %94, %91 : vector<16x512xi1>, vector<16x512xf32>
    %96 = arith.maximumf %88, %95 : vector<16x512xf32>
    %97 = arith.maximumf %78, %96 : vector<16x512xf32>
    %cst_43 = arith.constant 0.000000e+00 : f32
    %98 = vector.broadcast %cst_43 : f32 to vector<16x512xf32>
    %99 = arith.maximumf %97, %98 : vector<16x512xf32>
    %c0_44 = arith.constant 0 : index
    %c0_45 = arith.constant 0 : index
    %100 = vector.load %arg14[%c0_44, %c0_45] : memref<2x16xf32, #tpu.memory_space<vmem>>, vector<2x16xf32>
    %cst_46 = arith.constant dense<0.000000e+00> : vector<2x512xf32>
    %101 = tpu.matmul %100, %99, %cst_46 {dimension_numbers = #tpu.dot_dimension_numbers<[1], [0], [0], [1], [0, 0, 1, 1], [], []>} : vector<2x16xf32>, vector<16x512xf32>, vector<2x512xf32> -> vector<2x512xf32>
    %c0_47 = arith.constant 0 : index
    %c0_48 = arith.constant 0 : index
    %102 = vector.load %arg12[%c0_47, %c0_48] : memref<1x512xf32, #tpu.memory_space<vmem>>, vector<1x512xf32>
    %103 = vector.broadcast %102 : vector<1x512xf32> to vector<2x512xf32>
    %104 = arith.mulf %101, %103 : vector<2x512xf32>
    %cst_49 = arith.constant dense<0.000000e+00> : vector<2xf32>
    %105 = vector.multi_reduction <add>, %104, %cst_49 [1] : vector<2x512xf32> to vector<2xf32>
    %106 = vector.shape_cast %105 : vector<2xf32> to vector<2x1xf32>
    %c0_50 = arith.constant 0 : index
    %c0_51 = arith.constant 0 : index
    %107 = vector.load %arg13[%c0_50, %c0_51] : memref<1x1xf32, #tpu.memory_space<vmem>>, vector<1x1xf32>
    %108 = vector.broadcast %107 : vector<1x1xf32> to vector<2x1xf32>
    %109 = arith.addf %106, %108 : vector<2x1xf32>
    %110 = arith.negf %109 : vector<2x1xf32>
    %111 = math.exp %110 : vector<2x1xf32>
    %cst_52 = arith.constant 1.000000e+00 : f32
    %112 = vector.broadcast %cst_52 : f32 to vector<2x1xf32>
    %113 = arith.addf %112, %111 : vector<2x1xf32>
    %114 = arith.divf %112, %113 : vector<2x1xf32>
    %c0_53 = arith.constant 0 : index
    %c0_54 = arith.constant 0 : index
    %115 = vector.load %arg15[%c0_53, %c0_54] : memref<2x1xf32, #tpu.memory_space<vmem>>, vector<2x1xf32>
    tpu.vector_store %arg15[%c0_53, %c0_54], %114 {strides = array<i32>} : memref<2x1xf32, #tpu.memory_space<vmem>>, vector<2x1xf32>,
    return
  }
  func.func @transform_0(%arg0: i32) -> (i32, i32) {
    %c0_i32 = arith.constant 0 : i32
    %c0_i32_0 = arith.constant 0 : i32
    return %arg0, %c0_i32 : i32, i32
  }
  func.func @transform_1(%arg0: i32) -> (i32, i32) {
    %c0_i32 = arith.constant 0 : i32
    %c0_i32_0 = arith.constant 0 : i32
    %c0_i32_1 = arith.constant 0 : i32
    return %c0_i32, %c0_i32_0 : i32, i32
  }
  func.func @transform_2(%arg0: i32) -> (i32, i32) {
    %c0_i32 = arith.constant 0 : i32
    %c0_i32_0 = arith.constant 0 : i32
    %c0_i32_1 = arith.constant 0 : i32
    return %c0_i32, %c0_i32_0 : i32, i32
  }
  func.func @transform_3(%arg0: i32) -> (i32, i32) {
    %c0_i32 = arith.constant 0 : i32
    %c0_i32_0 = arith.constant 0 : i32
    %c0_i32_1 = arith.constant 0 : i32
    return %c0_i32, %c0_i32_0 : i32, i32
  }
  func.func @transform_4(%arg0: i32) -> (i32, i32) {
    %c0_i32 = arith.constant 0 : i32
    %c0_i32_0 = arith.constant 0 : i32
    %c0_i32_1 = arith.constant 0 : i32
    return %c0_i32, %c0_i32_0 : i32, i32
  }
  func.func @transform_5(%arg0: i32) -> (i32, i32) {
    %c0_i32 = arith.constant 0 : i32
    %c0_i32_0 = arith.constant 0 : i32
    %c0_i32_1 = arith.constant 0 : i32
    return %c0_i32, %c0_i32_0 : i32, i32
  }
  func.func @transform_6(%arg0: i32) -> (i32, i32) {
    %c0_i32 = arith.constant 0 : i32
    %c0_i32_0 = arith.constant 0 : i32
    %c0_i32_1 = arith.constant 0 : i32
    return %c0_i32, %c0_i32_0 : i32, i32
  }
  func.func @transform_7(%arg0: i32) -> (i32, i32) {
    %c0_i32 = arith.constant 0 : i32
    %c0_i32_0 = arith.constant 0 : i32
    %c0_i32_1 = arith.constant 0 : i32
    return %c0_i32, %c0_i32_0 : i32, i32
  }
  func.func @transform_8(%arg0: i32) -> (i32, i32) {
    %c0_i32 = arith.constant 0 : i32
    %c0_i32_0 = arith.constant 0 : i32
    %c0_i32_1 = arith.constant 0 : i32
    return %c0_i32, %c0_i32_0 : i32, i32
  }
  func.func @transform_9(%arg0: i32) -> (i32, i32) {
    %c0_i32 = arith.constant 0 : i32
    %c0_i32_0 = arith.constant 0 : i32
    %c0_i32_1 = arith.constant 0 : i32
    return %c0_i32, %c0_i32_0 : i32, i32
  }
  func.func @transform_10(%arg0: i32) -> (i32, i32) {
    %c0_i32 = arith.constant 0 : i32
    %c0_i32_0 = arith.constant 0 : i32
    %c0_i32_1 = arith.constant 0 : i32
    return %c0_i32, %c0_i32_0 : i32, i32
  }
  func.func @transform_11(%arg0: i32) -> (i32, i32) {
    %c0_i32 = arith.constant 0 : i32
    %c0_i32_0 = arith.constant 0 : i32
    %c0_i32_1 = arith.constant 0 : i32
    return %c0_i32, %c0_i32_0 : i32, i32
  }
  func.func @transform_12(%arg0: i32) -> (i32, i32) {
    %c0_i32 = arith.constant 0 : i32
    %c0_i32_0 = arith.constant 0 : i32
    %c0_i32_1 = arith.constant 0 : i32
    return %c0_i32, %c0_i32_0 : i32, i32
  }
  func.func @transform_13(%arg0: i32) -> (i32, i32) {
    %c0_i32 = arith.constant 0 : i32
    %c0_i32_0 = arith.constant 0 : i32
    %c0_i32_1 = arith.constant 0 : i32
    return %c0_i32, %c0_i32_0 : i32, i32
  }
  func.func @transform_14(%arg0: i32) -> (i32, i32) {
    %c0_i32 = arith.constant 0 : i32
    %c0_i32_0 = arith.constant 0 : i32
    return %arg0, %c0_i32 : i32, i32
  }
}

</mosaic_0001>

<bundles_post_ra>
// kernel: conjoined_forward.1
= control target key start
LH: loop header
LB: loop body
LE: loop exit
PB: predicated region body
PF: predicated region fallthrough
CT: control target
= control target key end

     0   :  { %v3646_v12 = vmov 0   ;;  %v238_v28 = vlaneseq  ;;  %vm261_vm1 = vcmask 523264   ;;  %vm2656_vm8 = vcmask 130048   ;;  %s4812_s1 = inlined_call_operand.vmem [shape: bf16[128,64], index: 1, kind: input, shape index: {}]   ;;  %s4813_s0 = inlined_call_operand.vmem [shape: bf16[64,128], index: 0, kind: input, shape index: {}]   ;;  %s4814_s3 = inlined_call_operand.vmem [shape: bf16[192,128], index: 3, kind: input, shape index: {}]   ;;  %s4815_s2 = inlined_call_operand.vmem [shape: f32[1,64], index: 2, kind: input, shape index: {}]   ;;  %s4816_s5 = inlined_call_operand.vmem [shape: bf16[384,128], index: 5, kind: input, shape index: {}]   ;;  %s4817_s7 = inlined_call_operand.vmem [shape: bf16[768,256], index: 7, kind: input, shape index: {}]   ;;  %s4818_s4 = inlined_call_operand.vmem [shape: f32[1,128], index: 4, kind: input, shape index: {}]   ;;  %s4819_s6 = inlined_call_operand.vmem [shape: f32[1,128], index: 6, kind: input, shape index: {}]   ;;  %s4820_s9 = inlined_call_operand.vmem [shape: bf16[512,512], index: 9, kind: input, shape index: {}]   ;;  %s4821_s8 = inlined_call_operand.vmem [shape: f32[1,256], index: 8, kind: input, shape index: {}]   ;;  %s4822_s10 = inlined_call_operand.vmem [shape: f32[1,512], index: 10, kind: input, shape index: {}]   ;;  %s4823_s13 = inlined_call_operand.vmem [shape: f32[2,16], index: 13, kind: input, shape index: {}]   ;;  %s4824_s12 = inlined_call_operand.<no memory space> [shape: f32[1,1], index: 12, kind: input, shape index: {}]   ;;  %s4825_s11 = inlined_call_operand.vmem [shape: f32[1,512], index: 11, kind: input, shape index: {}]   ;;  %s4826_s14 = inlined_call_operand.vmem [shape: f32[2,1], index: 14, kind: output, shape index: {}]  }
   0x1   :  { %v3258_v0 = vld [vmem:[%s4812_s1 + $0x38] sm:$0xff]   ;;  %v3259_v1 = vld [vmem:[%s4812_s1 + $0x30] sm:$0xff]   ;;  %v3260_v2 = vld [vmem:[%s4812_s1 + $0x28] sm:$0xff]   ;;  %vm2828_vm9 = vcmask 1041408   ;;  %vm2852_vm10 = vcmask 1024  }
   0x2   :  { %3191 = vmatprep.subr.bf16.mxu1 %v3258_v0  ;;  %v3261_v3 = vld [vmem:[%s4812_s1 + $0x20] sm:$0xff]   ;;  %v3262_v5 = vld [vmem:[%s4812_s1 + $0x18] sm:$0xff]   ;;  %v3263_v6 = vld [vmem:[%s4812_s1 + $0x10] sm:$0xff]   ;;  %v3796_v37 = vshrl.u32 %v238_v28, 7 }
   0x3   :  { %3192 = vmatpush3.bf16.msra.mxu1 %v3258_v0  ;;  %v3266_v4 = vld [vmem:[%s4813_s0] sm:$0xff]   ;;  %v3264_v7 = vld [vmem:[%s4812_s1 + $0x8] sm:$0xff]   ;;  %v3268_v10 = vld [vmem:[%s4813_s0 + $0x10] sm:$0xff]  }
   0x4   :  { %3193 = vmatprep.subr.bf16.mxu1 %v3259_v1  ;;  %3207 = vmatprep.mubr.bf16.mxu1 %v3266_v4  ;;  %v3265_v8 = vld [vmem:[%s4812_s1] sm:$0xff]   ;;  %v3267_v9 = vld [vmem:[%s4813_s0 + $0x8] sm:$0xff]   ;;  %v3269_v11 = vld [vmem:[%s4813_s0 + $0x18] sm:$0xff]   ;;  %vm240_vm0 = vcmp.lt.s32.totalorder %v3796_v37, 7  ;;  %vm829_vm2 = vcmp.lt.s32.totalorder %v3796_v37, 6  ;;  %vm1584_vm4 = vcmp.lt.s32.totalorder %v3796_v37, 1 }
   0x5   :  { %v3270_v13 = vld [vmem:[%s4814_s3 + $0x38] sm:$0xff]   ;;  %v3271_v14 = vld [vmem:[%s4814_s3 + $0x30] sm:$0xff]   ;;  %v3272_v15 = vld [vmem:[%s4814_s3 + $0x28] sm:$0xff]  }
   0x6   :  { %v3273_v16 = vld [vmem:[%s4814_s3 + $0x20] sm:$0xff]   ;;  %v3274_v17 = vld [vmem:[%s4814_s3 + $0x18] sm:$0xff]   ;;  %v3275_v18 = vld [vmem:[%s4814_s3 + $0x10] sm:$0xff]  }
   0x7   :  { %3194 = vmatpush3.bf16.msra.mxu1 %v3259_v1  ;;  %v3276_v19 = vld [vmem:[%s4814_s3 + $0x8] sm:$0xff]   ;;  %v3277_v20 = vld [vmem:[%s4814_s3] sm:$0xff]   ;;  %v3278_v21 = vld [vmem:[%s4814_s3 + $0x58] sm:$0xff]  }
   0x8   :  { %3195 = vmatprep.subr.bf16.mxu1 %v3260_v2  ;;  %v3279_v22 = vld [vmem:[%s4814_s3 + $0x50] sm:$0xff]   ;;  %v2858_v23 = vld [vmem:[%s4815_s2] ss:$0 sm:$0xff]  ;;  %v3280_v34 = vld [vmem:[%s4814_s3 + $0x48] sm:$0xff]  }
   0x9   :  { %v3281_v50 = vld [vmem:[%s4814_s3 + $0x40] sm:$0xff]   ;;  %s3647_s3 = smov 64  }
   0xb   :  { %3196 = vmatpush3.bf16.msra.mxu1 %v3260_v2 }
   0xc   :  { %3197 = vmatprep.subr.bf16.mxu1 %v3261_v3 }
   0xf   :  { %3198 = vmatpush3.bf16.msra.mxu1 %v3261_v3 }
  0x10   :  { %3199 = vmatprep.subr.bf16.mxu1 %v3262_v5 }
  0x13   :  { %3200 = vmatpush3.bf16.msra.mxu1 %v3262_v5 }
  0x14   :  { %3201 = vmatprep.subr.bf16.mxu1 %v3263_v6 }
  0x17   :  { %3202 = vmatpush3.bf16.msra.mxu1 %v3263_v6 }
  0x18   :  { %3203 = vmatprep.subr.bf16.mxu1 %v3264_v7 }
  0x1b   :  { %3204 = vmatpush3.bf16.msra.mxu1 %v3264_v7 }
  0x1c   :  { %3205 = vmatprep.subr.bf16.mxu1 %v3265_v8 }
  0x1f   :  { %3206 = vmatpush3.bf16.msra.mxu1 %v3265_v8 }
  0x20   :  { %417 = vmatprep.subr.bf16.mxu1 %v3646_v12 }
  0x22   :  { %3208 = vmatmul.mubr.bf16.vlgmr.msra.gmra.mxu1 %v3267_v9 }
  0x23   :  { %3211 = vmatprep.mubr.bf16.mxu1 %v3268_v10  ;;  %418 = vmatpush1.bf16.msra.mxu1 %v3270_v13  ;;  %v3282_v10 = vld [vmem:[%s4816_s5 + $0xb8] sm:$0xff]  }
  0x24   :  { %419 = vmatprep.subr.bf16.mxu1 %v3646_v12 }
  0x27   :  { %420 = vmatpush1.bf16.msra.mxu1 %v3271_v14 }
  0x28   :  { %421 = vmatprep.subr.bf16.mxu1 %v3646_v12 }
  0x2a   :  { %3212 = vmatmul.mubr.bf16.gmra.mxu1 %v3269_v11  ;;  %v3284_v11 = vld [vmem:[%s4816_s5 + $0x78] sm:$0xff]  }
  0x2b   :  { %422 = vmatpush1.bf16.msra.mxu1 %v3272_v15  ;;  %3153 = vmatprep.subr.bf16.mxu0 %v3284_v11 }
  0x2c   :  { %423 = vmatprep.subr.bf16.mxu1 %v3646_v12 }
  0x2f   :  { %424 = vmatpush1.bf16.msra.mxu1 %v3273_v16 }
  0x30   :  { %425 = vmatprep.subr.bf16.mxu1 %v3646_v12 }
  0x33   :  { %426 = vmatpush1.bf16.msra.mxu1 %v3274_v17 }
  0x34   :  { %427 = vmatprep.subr.bf16.mxu1 %v3646_v12 }
  0x37   :  { %428 = vmatpush1.bf16.msra.mxu1 %v3275_v18 }
  0x38   :  { %429 = vmatprep.subr.bf16.mxu1 %v3646_v12 }
  0x3b   :  { %430 = vmatpush1.bf16.msra.mxu1 %v3276_v19 }
  0x3c   :  { %431 = vmatprep.subr.bf16.mxu1 %v3646_v12 }
  0x3f   :  { %432 = vmatpush1.bf16.msra.mxu1 %v3277_v20  ;;  %v3283_v20 = vld [vmem:[%s4816_s5 + $0xb0] sm:$0xff]  }
  0x40   :  { %441 = vmatprep.subr.bf16.mxu1 %v3646_v12 }
  0x43   :  { %442 = vmatpush2.bf16.msra.mxu1 %v3278_v21 }
  0x44   :  { %443 = vmatprep.subr.bf16.mxu1 %v3646_v12 }
  0x47   :  { %444 = vmatpush2.bf16.msra.mxu1 %v3279_v22 }
  0x48   :  { %445 = vmatprep.subr.bf16.mxu1 %v3646_v12 }
  0x4b   :  { %446 = vmatpush2.bf16.msra.mxu1 %v3280_v34 }
  0x4c   :  { %447 = vmatprep.subr.bf16.mxu1 %v3646_v12  ;;  %v3285_v12 = vld [vmem:[%s4816_s5 + $0x38] sm:$0xff]  }
  0x4d   :  { %3154 = vmatpush3.bf16.msra.mxu0 %v3285_v12 }
  0x4f   :  { %448 = vmatpush2.bf16.msra.mxu1 %v3281_v50  ;;  %v3287_v50 = vld [vmem:[%s4816_s5 + $0x70] sm:$0xff]  }
  0x50   :  { %3215 = vmatprep.subr.bf16.mxu1 %v3282_v10  ;;  %3155 = vmatprep.subr.bf16.mxu0 %v3287_v50 }
  0xe2   :  { %v3209_v24 = vpop.f32.mrf.mxu1 }
  0xe3   :  { %v196_v25 = vadd.f32 %v3209_v24, %v2858_v23 }
  0xe4   :  { %v187_v26 = vpop.f32.mrf.mxu1 }
  0xe5   :  { %v188_v27 = vadd.f32 %v2858_v23, %v187_v26  ;;  %v220_v29 = vmul.f32 0.2, %v196_v25 }
  0xe6   :  { %v3210_v30 = vpop.f32.mrf.mxu1 }
  0xe7   :  { %v218_v31 = vmul.f32 0.2, %v188_v27  ;;  %v199_v32 = vadd.f32 %v3210_v30, %v2858_v23  ;;  %v3798_v38 = vmax.f32 %v196_v25, %v220_v29 }
  0xe8   :  { %v190_v33 = vpop.f32.mrf.mxu1 }
  0xe9   :  { %v221_v35 = vmul.f32 0.2, %v199_v32  ;;  %v191_v36 = vadd.f32 %v2858_v23, %v190_v33  ;;  %v226_v39 = vmax.f32 %v188_v27, %v218_v31  ;;  %v236_v47 = vrot.slane %v3798_v38, 1 }
  0xea   :  { %v3213_v40 = vpop.f32.mrf.mxu1 }
  0xeb   :  { %v3800_v41 = vmax.f32 %v199_v32, %v221_v35  ;;  %v219_v42 = vmul.f32 0.2, %v191_v36  ;;  %v234_v48 = vrot.slane %v226_v39, 1  ;;  %v212_v56 = vadd.f32 %v3213_v40, %v2858_v23 }
  0xec   :  { %v203_v43 = vpop.f32.mrf.mxu1 }
  0xed   :  { %v237_v44 = vrot.slane %v3800_v41, 1  ;;  %v227_v45 = vmax.f32 %v191_v36, %v219_v42  ;;  %v204_v46 = vadd.f32 %v2858_v23, %v203_v43  ;;  %v224_v2 = vmul.f32 0.2, %v212_v56 }
  0xee   :  { %v3214_v49 = vpop.f32.mrf.mxu1 }
  0xef   :  { %v235_v51 = vrot.slane %v227_v45, 1  ;;  %v215_v52 = vadd.f32 %v3214_v49, %v2858_v23  ;;  %v241_v54 = vsel %vm240_vm0, %v236_v47, %v237_v44  ;;  %v244_v55 = vsel %vm240_vm0, %v237_v44, %v234_v48  ;;  %v3286_v49 = vld [vmem:[%s4816_s5 + $0xa8] sm:$0xff]  }
  0xf0   :  { %v206_v53 = vpop.f32.mrf.mxu1  ;;  %v222_v57 = vmul.f32 0.2, %v204_v46  ;;  %v297_v61 = vpack.c.bf16 %v244_v55, %v241_v54  ;;  %v3253_v6 = vpack.i.bf16 %v244_v55, %v241_v54  ;;  %v232_v8 = vmax.f32 %v212_v56, %v224_v2  ;;  %v3291_v54 = vld [vmem:[%s4816_s5 + $0x28] sm:$0xff]   ;;  %v3292_v55 = vld [vmem:[%s4816_s5 + $0x98] sm:$0xff]   ;;  %v3293_v56 = vld [vmem:[%s4816_s5 + $0x60] sm:$0xff]  }
  0xf1   :  { %v207_v58 = vadd.f32 %v2858_v23, %v206_v53  ;;  %v242_v59 = vsel %vm240_vm0, %v235_v51, %v236_v47  ;;  %v243_v60 = vsel %vm240_vm0, %v234_v48, %v235_v51  ;;  %v225_v62 = vmul.f32 0.2, %v215_v52  ;;  %v3288_v51 = vld [vmem:[%s4816_s5 + $0x30] sm:$0xff]   ;;  %v3290_v53 = vld [vmem:[%s4816_s5 + $0x68] sm:$0xff]  }
  0xf2   :  { %v3248_v0 = vpack.i.bf16 %v242_v59, %v243_v60  ;;  %v295_v1 = vpack.c.bf16 %v242_v59, %v243_v60  ;;  %v230_v3 = vmax.f32 %v204_v46, %v222_v57  ;;  %v268_v24 = vrot.slane %v232_v8, 1  ;;  %3156 = vmatpush3.bf16.msra.mxu0 %v3288_v51  ;;  %v3294_v57 = vld [vmem:[%s4816_s5 + $0x20] sm:$0xff]   ;;  %v3296_v59 = vld [vmem:[%s4816_s5 + $0x58] sm:$0xff]   ;;  %v3303_v2 = vld [vmem:[%s4816_s5 + $0x8] sm:$0xff]  }
  0xf3   :  { %v223_v63 = vmul.f32 0.2, %v207_v58  ;;  %v233_v5 = vmax.f32 %v215_v52, %v225_v62  ;;  %v3289_v52 = vld [vmem:[%s4816_s5 + $0xa0] sm:$0xff]   ;;  %3157 = vmatprep.subr.bf16.mxu0 %v3290_v53  ;;  %v3297_v60 = vld [vmem:[%s4816_s5 + $0x18] sm:$0xff]   ;;  %v3299_v62 = vld [vmem:[%s4816_s5 + $0x50] sm:$0xff]  }
  0xf4   :  { %3249 = vrot.lane.b32.xlu1 %v3248_v0, %s3647_s3  ;;  %2884 = vmatprep.mubr.msk.bf16.mxu1 %vm261_vm1, %v295_v1  ;;  %v266_v25 = vrot.slane %v230_v3, 1  ;;  %v3301_v0 = vld [vmem:[%s4816_s5 + $0x80] sm:$0xff]   ;;  %v3302_v1 = vld [vmem:[%s4816_s5 + $0x48] sm:$0xff]  }
  0xf5   :  { %v231_v4 = vmax.f32 %v207_v58, %v223_v63  ;;  %v3243_v9 = vpack.i.bf16 %v233_v5, %v232_v8  ;;  %v269_v35 = vrot.slane %v233_v5, 1  ;;  %v3295_v58 = vld [vmem:[%s4816_s5 + $0x90] sm:$0xff]   ;;  %v3318_v53 = vld [vmem:[%s4817_s7 + $0x160] ss:$8 sps:$4 sm:$0xff]  }
  0xf6   :  { %3158 = vmatpush3.bf16.msra.mxu0 %v3291_v54  ;;  %v3300_v63 = vld [vmem:[%s4816_s5 + $0x10] sm:$0xff]  }
  0xf7   :  { %v3238_v7 = vpack.i.bf16 %v231_v4, %v230_v3  ;;  %v267_v23 = vrot.slane %v231_v4, 1  ;;  %v270_v40 = vsel %vm240_vm0, %v268_v24, %v269_v35  ;;  %3159 = vmatprep.subr.bf16.mxu0 %v3293_v56 }
  0xf8   :  { %3254 = vrot.lane.b32.xlu1 %v3253_v6, %s3647_s3  ;;  %v3314_v6 = vld [vmem:[%s4817_s7 + $0x174] ss:$8 sps:$4 sm:$0xff]  }
  0xf9   :  { %3239 = vrot.lane.b32.xlu0 %v3238_v7, %s3647_s3  ;;  %v271_v29 = vsel %vm240_vm0, %v267_v23, %v268_v24  ;;  %v272_v30 = vsel %vm240_vm0, %v266_v25, %v267_v23  ;;  %v2871_v7 = vld [vmem:[%s4818_s4] ss:$0 sm:$0xff] }
  0xfa   :  { %v299_v34 = vpack.c.bf16 %v271_v29, %v272_v30  ;;  %3160 = vmatpush3.bf16.msra.mxu0 %v3294_v57  ;;  %v3306_v57 = vld [vmem:[%s4817_s7 + $0x70] ss:$8 sps:$4 sm:$0xff]  }
  0xfb   :  { %3161 = vmatprep.subr.bf16.mxu0 %v3296_v59 }
  0xfd   :  { %3244 = vrot.lane.b32.xlu0 %v3243_v9, %s3647_s3 }
  0xfe   :  { %3162 = vmatpush3.bf16.msra.mxu0 %v3297_v60  ;;  %v3311_v60 = vld [vmem:[%s4817_s7 + $0x64] ss:$8 sps:$4 sm:$0xff]  }
  0xff   :  { %3163 = vmatprep.subr.bf16.mxu0 %v3299_v62 }
 0x102   :  { %3164 = vmatpush3.bf16.msra.mxu0 %v3300_v63  ;;  %v3324_v63 = vld [vmem:[%s4817_s7 + $0x150] ss:$8 sps:$4 sm:$0xff]  }
 0x103   :  { %3165 = vmatprep.subr.bf16.mxu0 %v3302_v1  ;;  %v3332_v1 = vld [vmem:[%s4817_s7 + $0x144] ss:$8 sps:$4 sm:$0xff]  }
 0x106   :  { %3166 = vmatpush3.bf16.msra.mxu0 %v3303_v2 }
 0x166   :  { %v3250_v28 = vpop.permute.xlu1 %3249 }
 0x167   :  { %v3252_v32 = vunpack.i.h.bf16 %v3250_v28  ;;  %v3251_v33 = vunpack.i.l.bf16 %v3250_v28 }
 0x169   :  { %v290_v36 = vsel %vm261_vm1, %v230_v3, %v3251_v33  ;;  %v3304_v3 = vld [vmem:[%s4816_s5 + $0x40] sm:$0xff]  }
 0x16a   :  { %3167 = vmatprep.subr.bf16.mxu0 %v3304_v3  ;;  %v3309_v3 = vld [vmem:[%s4817_s7 + $0x60] ss:$8 sps:$4 sm:$0xff]  }
 0x16b   :  { %v3240_v13 = vpop.permute.xlu0 %3239 }
 0x16c   :  { %v3242_v14 = vunpack.i.h.bf16 %v3240_v13  ;;  %v3241_v15 = vunpack.i.l.bf16 %v3240_v13 }
 0x16e   :  { %v262_v16 = vsel %vm261_vm1, %v226_v39, %v3241_v15  ;;  %v263_v17 = vsel %vm261_vm1, %v227_v45, %v3242_v14  ;;  %v3255_v39 = vpop.permute.xlu1 %3254 }
 0x16f   :  { %v294_v18 = vpack.c.bf16 %v263_v17, %v262_v16  ;;  %v3245_v19 = vpop.permute.xlu0 %3244  ;;  %v3257_v43 = vunpack.i.h.bf16 %v3255_v39  ;;  %v3256_v44 = vunpack.i.l.bf16 %v3255_v39 }
 0x170   :  { %v3247_v21 = vunpack.i.h.bf16 %v3245_v19  ;;  %v3246_v22 = vunpack.i.l.bf16 %v3245_v19 }
 0x171   :  { %450 = vmatmul.mubr.bf16.vlgmr.msra.gmra.mxu1 %v294_v18  ;;  %v292_v46 = vsel %vm261_vm1, %v232_v8, %v3256_v44  ;;  %v293_v47 = vsel %vm261_vm1, %v233_v5, %v3257_v43  ;;  %v3308_v5 = vld [vmem:[%s4817_s7 + $0x74] ss:$8 sps:$4 sm:$0xff]   ;;  %v3312_v44 = vld [vmem:[%s4817_s7 + $0x170] ss:$8 sps:$4 sm:$0xff]  }
 0x172   :  { %2885 = vmatprep.mubr.msk.bf16.mxu1 %vm261_vm1, %v297_v61  ;;  %3216 = vmatpush3.bf16.msra.mxu1 %v3282_v10  ;;  %v264_v26 = vsel %vm261_vm1, %v3798_v38, %v3246_v22  ;;  %v265_v27 = vsel %vm261_vm1, %v3800_v41, %v3247_v21  ;;  %v291_v38 = vsel %vm261_vm1, %v231_v4, %v3252_v32  ;;  %v3298_v61 = vld [vmem:[%s4816_s5 + $0x88] sm:$0xff]   ;;  %v3305_v4 = vld [vmem:[%s4816_s5] sm:$0xff]  }
 0x173   :  { %3217 = vmatprep.subr.bf16.mxu1 %v3283_v20  ;;  %v296_v31 = vpack.c.bf16 %v265_v27, %v264_v26  ;;  %v273_v41 = vsel %vm240_vm0, %v269_v35, %v266_v25  ;;  %v298_v42 = vpack.c.bf16 %v291_v38, %v290_v36  ;;  %v300_v48 = vpack.c.bf16 %v293_v47, %v292_v46  ;;  %v3320_v47 = vld [vmem:[%s4817_s7 + $0x164] ss:$8 sps:$4 sm:$0xff]  }
 0x174   :  { %v301_v45 = vpack.c.bf16 %v273_v41, %v270_v40  ;;  %3168 = vmatpush3.bf16.msra.mxu0 %v3305_v4  ;;  %v3317_v4 = vld [vmem:[%s4817_s7 + $0x54] ss:$8 sps:$4 sm:$0xff]  }
 0x175   :  { %1428 = vmatprep.subr.bf16.mxu0 %v3308_v5 }
 0x176   :  { %3218 = vmatpush3.bf16.msra.mxu1 %v3283_v20 }
 0x177   :  { %3219 = vmatprep.subr.bf16.mxu1 %v3286_v49 }
 0x179   :  { %458 = vmatmul.mubr.bf16.gmra.mxu1 %v296_v31 }
 0x17a   :  { %2886 = vmatprep.mubr.msk.bf16.mxu1 %vm261_vm1, %v299_v34  ;;  %3220 = vmatpush3.bf16.msra.mxu1 %v3286_v49 }
 0x17b   :  { %3221 = vmatprep.subr.bf16.mxu1 %v3289_v52 }
 0x17e   :  { %3222 = vmatpush3.bf16.msra.mxu1 %v3289_v52 }
 0x17f   :  { %3223 = vmatprep.subr.bf16.mxu1 %v3292_v55 }
 0x181   :  { %466 = vmatmul.mubr.bf16.gmra.mxu1 %v298_v42 }
 0x182   :  { %2887 = vmatprep.mubr.msk.bf16.mxu1 %vm261_vm1, %v301_v45  ;;  %3224 = vmatpush3.bf16.msra.mxu1 %v3292_v55  ;;  %v3326_v55 = vld [vmem:[%s4817_s7 + $0x154] ss:$8 sps:$4 sm:$0xff]  }
 0x183   :  { %3225 = vmatprep.subr.bf16.mxu1 %v3295_v58 }
 0x186   :  { %3226 = vmatpush3.bf16.msra.mxu1 %v3295_v58 }
 0x187   :  { %3227 = vmatprep.subr.bf16.mxu1 %v3298_v61 }
 0x189   :  { %474 = vmatmul.mubr.bf16.gmra.mxu1 %v300_v48 }
 0x18a   :  { %3228 = vmatpush3.bf16.msra.mxu1 %v3298_v61 }
 0x18b   :  { %3229 = vmatprep.subr.bf16.mxu1 %v3301_v0 }
 0x18e   :  { %3230 = vmatpush3.bf16.msra.mxu1 %v3301_v0 }
 0x18f   :  { %1471 = vmatprep.subr.bf16.mxu1 %v3314_v6 }
 0x231   :  { %v451_v8 = vpop.f32.mrf.mxu1 }
 0x232   :  { %v452_v10 = vadd.f32 %v2871_v7, %v451_v8  ;;  %v3338_v8 = vld [vmem:[%s4817_s7 + $0x134] ss:$8 sps:$4 sm:$0xff]  }
 0x233   :  { %v453_v9 = vpop.f32.mrf.mxu1 }
 0x234   :  { %v482_v14 = vmul.f32 0.2, %v452_v10 }
 0x235   :  { %v454_v11 = vpop.f32.mrf.mxu1 }
 0x236   :  { %v455_v12 = vadd.f32 %v2871_v7, %v454_v11  ;;  %v490_v20 = vmax.f32 %v452_v10, %v482_v14  ;;  %v3315_v10 = vld [vmem:[%s4817_s7 + $0x50] ss:$8 sps:$4 sm:$0xff]   ;;  %v3344_v14 = vld [vmem:[%s4817_s7 + $0x124] ss:$8 sps:$4 sm:$0xff]  }
 0x237   :  { %v456_v13 = vpop.f32.mrf.mxu1 }
 0x238   :  { %v483_v15 = vmul.f32 0.2, %v455_v12  ;;  %v498_v27 = vrot.slane %v490_v20, 1  ;;  %v3336_v13 = vld [vmem:[%s4817_s7 + $0x130] ss:$8 sps:$4 sm:$0xff]  }
 0x239   :  { %v459_v16 = vpop.f32.mrf.mxu1 }
 0x23a   :  { %v491_v17 = vmax.f32 %v455_v12, %v483_v15  ;;  %v460_v18 = vadd.f32 %v2871_v7, %v459_v16  ;;  %v3323_v12 = vld [vmem:[%s4817_s7 + $0x44] ss:$8 sps:$4 sm:$0xff]   ;;  %v3321_v15 = vld [vmem:[%s4817_s7 + $0x40] ss:$8 sps:$4 sm:$0xff]   ;;  %v3329_v16 = vld [vmem:[%s4817_s7 + $0x34] ss:$8 sps:$4 sm:$0xff]  }
 0x23b   :  { %v461_v19 = vpop.f32.mrf.mxu1 }
 0x23c   :  { %v484_v21 = vmul.f32 0.2, %v460_v18  ;;  %v499_v23 = vrot.slane %v491_v17, 1  ;;  %v506_v59 = vpack.c.bf16 %v491_v17, %v490_v20  ;;  %v3342_v17 = vld [vmem:[%s4817_s7 + $0x120] ss:$8 sps:$4 sm:$0xff]  }
 0x23d   :  { %v462_v22 = vpop.f32.mrf.mxu1  ;;  %v3327_v19 = vld [vmem:[%s4817_s7 + $0x30] ss:$8 sps:$4 sm:$0xff]   ;;  %v3335_v20 = vld [vmem:[%s4817_s7 + $0x24] ss:$8 sps:$4 sm:$0xff]  }
 0x23e   :  { %v3919_v24 = vmax.f32 %v460_v18, %v484_v21  ;;  %v463_v25 = vadd.f32 %v2871_v7, %v462_v22  ;;  %v504_v34 = vsel %vm240_vm0, %v498_v27, %v499_v23  ;;  %v3350_v18 = vld [vmem:[%s4817_s7 + $0x114] ss:$8 sps:$4 sm:$0xff]   ;;  %v3348_v21 = vld [vmem:[%s4817_s7 + $0x110] ss:$8 sps:$4 sm:$0xff]   ;;  %v3333_v22 = vld [vmem:[%s4817_s7 + $0x20] ss:$8 sps:$4 sm:$0xff]  }
 0x23f   :  { %v464_v26 = vpop.f32.mrf.mxu1 }
 0x240   :  { %v500_v28 = vrot.slane %v3919_v24, 1  ;;  %v485_v29 = vmul.f32 0.2, %v463_v25  ;;  %v3345_v26 = vld [vmem:[%s4817_s7] ss:$8 sps:$4 sm:$0xff]  }
 0x241   :  { %v467_v30 = vpop.f32.mrf.mxu1 }
 0x242   :  { %v493_v31 = vmax.f32 %v463_v25, %v485_v29  ;;  %v468_v32 = vadd.f32 %v2871_v7, %v467_v30  ;;  %v503_v33 = vsel %vm240_vm0, %v499_v23, %v500_v28  ;;  %v3341_v23 = vld [vmem:[%s4817_s7 + $0x14] ss:$8 sps:$4 sm:$0xff]   ;;  %v3347_v25 = vld [vmem:[%s4817_s7 + $0x4] ss:$8 sps:$4 sm:$0xff]   ;;  %v3354_v29 = vld [vmem:[%s4817_s7 + $0x100] ss:$8 sps:$4 sm:$0xff]  }
 0x243   :  { %v469_v35 = vpop.f32.mrf.mxu1  ;;  %v508_v36 = vpack.c.bf16 %v503_v33, %v504_v34  ;;  %v3356_v30 = vld [vmem:[%s4817_s7 + $0x104] ss:$8 sps:$4 sm:$0xff]   ;;  %v3360_v33 = vld [vmem:[%s4817_s7 + $0x1f0] ss:$8 sps:$4 sm:$0xff]   ;;  %v3362_v34 = vld [vmem:[%s4817_s7 + $0x1f4] ss:$8 sps:$4 sm:$0xff]  }
 0x244   :  { %v501_v38 = vrot.slane %v493_v31, 1  ;;  %v486_v42 = vmul.f32 0.2, %v468_v32  ;;  %v509_v11 = vpack.c.bf16 %v493_v31, %v3919_v24  ;;  %v3339_v24 = vld [vmem:[%s4817_s7 + $0x10] ss:$8 sps:$4 sm:$0xff]  }
 0x245   :  { %v470_v39 = vpop.f32.mrf.mxu1  ;;  %3231 = vmatprep.mubr.bf16.mxu1 %v508_v36  ;;  %v3357_v31 = vld [vmem:[%s4817_s7 + $0xe0] ss:$8 sps:$4 sm:$0xff]   ;;  %v3365_v35 = vld [vmem:[%s4817_s7 + $0xd4] ss:$8 sps:$4 sm:$0xff]   ;;  %v3368_v36 = vld [vmem:[%s4817_s7 + $0x1e4] ss:$8 sps:$4 sm:$0xff]  }
 0x246   :  { %v502_v40 = vsel %vm240_vm0, %v500_v28, %v501_v38  ;;  %v505_v41 = vsel %vm240_vm0, %v501_v38, %v498_v27  ;;  %v471_v43 = vadd.f32 %v2871_v7, %v470_v39  ;;  %v494_v51 = vmax.f32 %v468_v32, %v486_v42  ;;  %v3351_v27 = vld [vmem:[%s4817_s7 + $0xf0] ss:$8 sps:$4 sm:$0xff]   ;;  %v3353_v28 = vld [vmem:[%s4817_s7 + $0xf4] ss:$8 sps:$4 sm:$0xff]   ;;  %v3359_v32 = vld [vmem:[%s4817_s7 + $0xe4] ss:$8 sps:$4 sm:$0xff]  }
 0x247   :  { %v511_v45 = vpack.c.bf16 %v505_v41, %v502_v40  ;;  %v472_v46 = vpop.f32.mrf.mxu1  ;;  %v3363_v38 = vld [vmem:[%s4817_s7 + $0xd0] ss:$8 sps:$4 sm:$0xff]   ;;  %v3366_v39 = vld [vmem:[%s4817_s7 + $0x1e0] ss:$8 sps:$4 sm:$0xff]   ;;  %v3371_v40 = vld [vmem:[%s4817_s7 + $0xc4] ss:$8 sps:$4 sm:$0xff]  }
 0x248   :  { %v487_v48 = vmul.f32 0.2, %v471_v43  ;;  %v3374_v41 = vld [vmem:[%s4817_s7 + $0x1d4] ss:$8 sps:$4 sm:$0xff]   ;;  %v3369_v42 = vld [vmem:[%s4817_s7 + $0xc0] ss:$8 sps:$4 sm:$0xff]  }
 0x249   :  { %v475_v49 = vpop.f32.mrf.mxu1  ;;  %3232 = vmatmul.mubr.bf16.vlgmr.msra.gmra.mxu1 %v511_v45  ;;  %v3380_v45 = vld [vmem:[%s4817_s7 + $0x1c4] ss:$8 sps:$4 sm:$0xff]   ;;  %v3375_v46 = vld [vmem:[%s4817_s7 + $0xb0] ss:$8 sps:$4 sm:$0xff]  }
 0x24a   :  { %v476_v50 = vadd.f32 %v2871_v7, %v475_v49  ;;  %v495_v52 = vmax.f32 %v471_v43, %v487_v48  ;;  %1472 = vmatpush1.bf16.msra.mxu1 %v3312_v44  ;;  %v3372_v43 = vld [vmem:[%s4817_s7 + $0x1d0] ss:$8 sps:$4 sm:$0xff]   ;;  %v3377_v44 = vld [vmem:[%s4817_s7 + $0xb4] ss:$8 sps:$4 sm:$0xff]   ;;  %v3383_v48 = vld [vmem:[%s4817_s7 + $0xa4] ss:$8 sps:$4 sm:$0xff]  }
 0x24b   :  { %v477_v54 = vpop.f32.mrf.mxu1  ;;  %1473 = vmatprep.subr.bf16.mxu1 %v3320_v47  ;;  %v3378_v47 = vld [vmem:[%s4817_s7 + $0x1c0] ss:$8 sps:$4 sm:$0xff]   ;;  %v3386_v49 = vld [vmem:[%s4817_s7 + $0x1b4] ss:$8 sps:$4 sm:$0xff]  }
 0x24c   :  { %v507_v56 = vpack.c.bf16 %v495_v52, %v494_v51  ;;  %v488_v61 = vmul.f32 0.2, %v476_v50  ;;  %v3384_v51 = vld [vmem:[%s4817_s7 + $0x1b0] ss:$8 sps:$4 sm:$0xff]   ;;  %v3389_v52 = vld [vmem:[%s4817_s7 + $0x94] ss:$8 sps:$4 sm:$0xff]  }
 0x24d   :  { %v478_v58 = vpop.f32.mrf.mxu1  ;;  %v3387_v54 = vld [vmem:[%s4817_s7 + $0x90] ss:$8 sps:$4 sm:$0xff]  }
 0x24e   :  { %v479_v62 = vadd.f32 %v2871_v7, %v478_v58  ;;  %743 = vmatprep.mubr.bf16.mxu0 %v507_v56  ;;  %1474 = vmatpush1.bf16.msra.mxu1 %v3318_v53  ;;  %v496_v5 = vmax.f32 %v476_v50, %v488_v61  ;;  %v3330_v7 = vld [vmem:[%s4817_s7 + $0x140] ss:$8 sps:$4 sm:$0xff]   ;;  %v3392_v53 = vld [vmem:[%s4817_s7 + $0x1a4] ss:$8 sps:$4 sm:$0xff]   ;;  %v3404_v61 = vld [vmem:[%s4817_s7 + $0x274] ss:$8 sps:$4 sm:$0xff]  }
 0x24f   :  { %v480_v0 = vpop.f32.mrf.mxu1  ;;  %744 = vmatmul.mubr.bf16.vlgmr.msra.gmra.mxu0 %v506_v59  ;;  %1475 = vmatprep.subr.bf16.mxu1 %v3326_v55  ;;  %v3381_v50 = vld [vmem:[%s4817_s7 + $0xa0] ss:$8 sps:$4 sm:$0xff]   ;;  %v3395_v56 = vld [vmem:[%s4817_s7 + $0x84] ss:$8 sps:$4 sm:$0xff]   ;;  %v3396_v59 = vld [vmem:[%s4817_s7 + $0x190] ss:$8 sps:$4 sm:$0xff]  }
 0x250   :  { %v489_v2 = vmul.f32 0.2, %v479_v62  ;;  %1429 = vmatpush1.bf16.msra.mxu0 %v3306_v57  ;;  %v3390_v55 = vld [vmem:[%s4817_s7 + $0x1a0] ss:$8 sps:$4 sm:$0xff]   ;;  %v3398_v57 = vld [vmem:[%s4817_s7 + $0x194] ss:$8 sps:$4 sm:$0xff]  }
 0x251   :  { %1430 = vmatprep.subr.bf16.mxu0 %v3311_v60  ;;  %v3393_v58 = vld [vmem:[%s4817_s7 + $0x80] ss:$8 sps:$4 sm:$0xff]   ;;  %v3401_v60 = vld [vmem:[%s4817_s7 + $0x184] ss:$8 sps:$4 sm:$0xff]  }
 0x252   :  { %v497_v6 = vmax.f32 %v479_v62, %v489_v2  ;;  %1476 = vmatpush1.bf16.msra.mxu1 %v3324_v63  ;;  %v3399_v62 = vld [vmem:[%s4817_s7 + $0x180] ss:$8 sps:$4 sm:$0xff]  }
 0x253   :  { %1477 = vmatprep.subr.bf16.mxu1 %v3332_v1 }
 0x254   :  { %v510_v9 = vpack.c.bf16 %v497_v6, %v496_v5  ;;  %1431 = vmatpush1.bf16.msra.mxu0 %v3309_v3  ;;  %v2888_v6 = vld [vmem:[%s4819_s6] ss:$0 sm:$0xff] }
 0x255   :  { %1432 = vmatprep.subr.bf16.mxu0 %v3317_v4 }
 0x256   :  { %751 = vmatprep.mubr.bf16.mxu0 %v510_v9  ;;  %1478 = vmatpush1.bf16.msra.mxu1 %v3330_v7 }
 0x257   :  { %752 = vmatmul.mubr.bf16.gmra.mxu0 %v509_v11  ;;  %1479 = vmatprep.subr.bf16.mxu1 %v3338_v8 }
 0x258   :  { %1433 = vmatpush1.bf16.msra.mxu0 %v3315_v10 }
 0x259   :  { %1434 = vmatprep.subr.bf16.mxu0 %v3323_v12 }
 0x25a   :  { %1480 = vmatpush1.bf16.msra.mxu1 %v3336_v13 }
 0x25b   :  { %1481 = vmatprep.subr.bf16.mxu1 %v3344_v14 }
 0x25c   :  { %1435 = vmatpush1.bf16.msra.mxu0 %v3321_v15 }
 0x25d   :  { %1436 = vmatprep.subr.bf16.mxu0 %v3329_v16 }
 0x25e   :  { %1482 = vmatpush1.bf16.msra.mxu1 %v3342_v17 }
 0x25f   :  { %1483 = vmatprep.subr.bf16.mxu1 %v3350_v18 }
 0x260   :  { %1437 = vmatpush1.bf16.msra.mxu0 %v3327_v19 }
 0x261   :  { %1438 = vmatprep.subr.bf16.mxu0 %v3335_v20 }
 0x262   :  { %1484 = vmatpush1.bf16.msra.mxu1 %v3348_v21 }
 0x263   :  { %1485 = vmatprep.subr.bf16.mxu1 %v3356_v30 }
 0x264   :  { %1439 = vmatpush1.bf16.msra.mxu0 %v3333_v22 }
 0x265   :  { %1440 = vmatprep.subr.bf16.mxu0 %v3341_v23 }
 0x266   :  { %1486 = vmatpush1.bf16.msra.mxu1 %v3354_v29 }
 0x267   :  { %1487 = vmatprep.subr.bf16.mxu1 %v3362_v34 }
 0x268   :  { %1441 = vmatpush1.bf16.msra.mxu0 %v3339_v24 }
 0x269   :  { %1442 = vmatprep.subr.bf16.mxu0 %v3347_v25 }
 0x26a   :  { %1488 = vmatpush2.bf16.msra.mxu1 %v3360_v33 }
 0x26b   :  { %1489 = vmatprep.subr.bf16.mxu1 %v3368_v36  ;;  %v3402_v36 = vld [vmem:[%s4817_s7 + $0x270] ss:$8 sps:$4 sm:$0xff]  }
 0x26c   :  { %1443 = vmatpush1.bf16.msra.mxu0 %v3345_v26 }
 0x26d   :  { %1444 = vmatprep.subr.bf16.mxu0 %v3353_v28 }
 0x26e   :  { %1490 = vmatpush2.bf16.msra.mxu1 %v3366_v39 }
 0x26f   :  { %1491 = vmatprep.subr.bf16.mxu1 %v3374_v41 }
 0x270   :  { %1445 = vmatpush2.bf16.msra.mxu0 %v3351_v27 }
 0x271   :  { %1446 = vmatprep.subr.bf16.mxu0 %v3359_v32 }
 0x272   :  { %1492 = vmatpush2.bf16.msra.mxu1 %v3372_v43 }
 0x273   :  { %1493 = vmatprep.subr.bf16.mxu1 %v3380_v45 }
 0x274   :  { %1447 = vmatpush2.bf16.msra.mxu0 %v3357_v31 }
 0x275   :  { %1448 = vmatprep.subr.bf16.mxu0 %v3365_v35 }
 0x276   :  { %1494 = vmatpush2.bf16.msra.mxu1 %v3378_v47 }
 0x277   :  { %1495 = vmatprep.subr.bf16.mxu1 %v3386_v49 }
 0x278   :  { %1449 = vmatpush2.bf16.msra.mxu0 %v3363_v38 }
 0x279   :  { %1450 = vmatprep.subr.bf16.mxu0 %v3371_v40 }
 0x27a   :  { %1496 = vmatpush2.bf16.msra.mxu1 %v3384_v51 }
 0x27b   :  { %1497 = vmatprep.subr.bf16.mxu1 %v3392_v53  ;;  %v3410_v53 = vld [vmem:[%s4817_s7 + $0x254] ss:$8 sps:$4 sm:$0xff]  }
 0x27c   :  { %1451 = vmatpush2.bf16.msra.mxu0 %v3369_v42 }
 0x27d   :  { %1452 = vmatprep.subr.bf16.mxu0 %v3377_v44 }
 0x27e   :  { %1498 = vmatpush2.bf16.msra.mxu1 %v3390_v55  ;;  %v3413_v55 = vld [vmem:[%s4817_s7 + $0x244] ss:$8 sps:$4 sm:$0xff]  }
 0x27f   :  { %1499 = vmatprep.subr.bf16.mxu1 %v3398_v57  ;;  %v3416_v57 = vld [vmem:[%s4817_s7 + $0x234] ss:$8 sps:$4 sm:$0xff]  }
 0x280   :  { %1453 = vmatpush2.bf16.msra.mxu0 %v3375_v46 }
 0x281   :  { %1454 = vmatprep.subr.bf16.mxu0 %v3383_v48  ;;  %v3407_v48 = vld [vmem:[%s4817_s7 + $0x264] ss:$8 sps:$4 sm:$0xff]  }
 0x282   :  { %1500 = vmatpush2.bf16.msra.mxu1 %v3396_v59  ;;  %v3419_v59 = vld [vmem:[%s4817_s7 + $0x224] ss:$8 sps:$4 sm:$0xff]  }
 0x283   :  { %1501 = vmatprep.subr.bf16.mxu1 %v3401_v60  ;;  %v3417_v60 = vld [vmem:[%s4817_s7 + $0x220] ss:$8 sps:$4 sm:$0xff]  }
 0x284   :  { %1455 = vmatpush2.bf16.msra.mxu0 %v3381_v50 }
 0x285   :  { %1456 = vmatprep.subr.bf16.mxu0 %v3389_v52  ;;  %v3405_v52 = vld [vmem:[%s4817_s7 + $0x260] ss:$8 sps:$4 sm:$0xff]  }
 0x286   :  { %1502 = vmatpush2.bf16.msra.mxu1 %v3399_v62  ;;  %v3420_v62 = vld [vmem:[%s4817_s7 + $0x210] ss:$8 sps:$4 sm:$0xff]  }
 0x288   :  { %1457 = vmatpush2.bf16.msra.mxu0 %v3387_v54  ;;  %v3408_v54 = vld [vmem:[%s4817_s7 + $0x250] ss:$8 sps:$4 sm:$0xff]  }
 0x289   :  { %1458 = vmatprep.subr.bf16.mxu0 %v3395_v56  ;;  %v3411_v56 = vld [vmem:[%s4817_s7 + $0x240] ss:$8 sps:$4 sm:$0xff]  }
 0x28c   :  { %1459 = vmatpush2.bf16.msra.mxu0 %v3393_v58  ;;  %v3414_v58 = vld [vmem:[%s4817_s7 + $0x230] ss:$8 sps:$4 sm:$0xff]  }
 0x28d   :  { %1514 = vmatprep.subr.bf16.mxu0 %v3404_v61  ;;  %v3422_v61 = vld [vmem:[%s4817_s7 + $0x214] ss:$8 sps:$4 sm:$0xff]  }
 0x309   :  { %v3233_v63 = vpop.f32.mrf.mxu1 }
 0x30b   :  { %v794_v1 = vpop.f32.mrf.mxu1 }
 0x30d   :  { %v3234_v5 = vpop.f32.mrf.mxu1 }
 0x30f   :  { %v3169_v0 = vpop.f32.mrf.mxu0  ;;  %v797_v12 = vpop.f32.mrf.mxu1 }
 0x311   :  { %v3170_v2 = vpop.f32.mrf.mxu0 }
 0x312   :  { %v3171_v4 = vadd.f32 %v3170_v2, %v3169_v0  ;;  %v3423_v0 = vld [vmem:[%s4817_s7 + $0x200] ss:$8 sps:$4 sm:$0xff]   ;;  %v3426_v2 = vld [vmem:[%s4817_s7 + $0x2f0] ss:$8 sps:$4 sm:$0xff]  }
 0x313   :  { %v3172_v3 = vpop.f32.mrf.mxu0 }
 0x314   :  { %v746_v10 = vadd.f32 %v3171_v4, %v2888_v6  ;;  %v3429_v4 = vld [vmem:[%s4817_s7 + $0x2e0] ss:$8 sps:$4 sm:$0xff]  }
 0x315   :  { %v3173_v7 = vpop.f32.mrf.mxu0 }
 0x316   :  { %v3174_v8 = vadd.f32 %v3173_v7, %v3172_v3  ;;  %v795_v17 = vadd.f32 %v794_v1, %v746_v10  ;;  %v3428_v1 = vld [vmem:[%s4817_s7 + $0x2f4] ss:$8 sps:$4 sm:$0xff]   ;;  %v3431_v3 = vld [vmem:[%s4817_s7 + $0x2e4] ss:$8 sps:$4 sm:$0xff]   ;;  %v3438_v10 = vld [vmem:[%s4817_s7 + $0x2b0] ss:$8 sps:$4 sm:$0xff]  }
 0x317   :  { %v3175_v9 = vpop.f32.mrf.mxu0  ;;  %v3437_v7 = vld [vmem:[%s4817_s7 + $0x2c4] ss:$8 sps:$4 sm:$0xff]  }
 0x318   :  { %v749_v11 = vadd.f32 %v3174_v8, %v2888_v6  ;;  %v809_v23 = vmul.f32 0.2, %v795_v17  ;;  %v3435_v8 = vld [vmem:[%s4817_s7 + $0x2c0] ss:$8 sps:$4 sm:$0xff]  }
 0x319   :  { %v3176_v13 = vpop.f32.mrf.mxu0 }
 0x31a   :  { %v798_v14 = vadd.f32 %v797_v12, %v749_v11  ;;  %v3177_v15 = vadd.f32 %v3176_v13, %v3175_v9  ;;  %v4125_v28 = vmax.f32 %v795_v17, %v809_v23  ;;  %v3440_v9 = vld [vmem:[%s4817_s7 + $0x2b4] ss:$8 sps:$4 sm:$0xff]   ;;  %v3443_v11 = vld [vmem:[%s4817_s7 + $0x2a4] ss:$8 sps:$4 sm:$0xff]   ;;  %v3441_v12 = vld [vmem:[%s4817_s7 + $0x2a0] ss:$8 sps:$4 sm:$0xff]  }
 0x31b   :  { %v3178_v16 = vpop.f32.mrf.mxu0  ;;  %v3446_v13 = vld [vmem:[%s4817_s7 + $0x294] ss:$8 sps:$4 sm:$0xff]  }
 0x31c   :  { %v754_v18 = vadd.f32 %v3177_v15, %v2888_v6  ;;  %v810_v20 = vmul.f32 0.2, %v798_v14  ;;  %v817_v33 = vrot.slane %v4125_v28, 1  ;;  %v3449_v15 = vld [vmem:[%s4817_s7 + $0x284] ss:$8 sps:$4 sm:$0xff]   ;;  %v825_v17 = vrot.slane %v4125_v28, 2 }
 0x31d   :  { %v3179_v19 = vpop.f32.mrf.mxu0  ;;  %v3452_v23 = vld [vmem:[%s4820_s9 + $0xe4] ss:$16 sps:$4 sm:$0xff]  }
 0x31e   :  { %v803_v21 = vadd.f32 %v3233_v63, %v754_v18  ;;  %v3180_v22 = vadd.f32 %v3179_v19, %v3178_v16  ;;  %v4123_v26 = vmax.f32 %v798_v14, %v810_v20  ;;  %v3425_v63 = vld [vmem:[%s4817_s7 + $0x204] ss:$8 sps:$4 sm:$0xff]   ;;  %v3444_v14 = vld [vmem:[%s4817_s7 + $0x290] ss:$8 sps:$4 sm:$0xff]   ;;  %v3447_v18 = vld [vmem:[%s4817_s7 + $0x280] ss:$8 sps:$4 sm:$0xff]   ;;  %2411 = vmatprep.subr.bf16.mxu1 %v3452_v23 }
 0x31f   :  { %v3548_v23 = vld [vmem:[%s4820_s9 + $0xec] ss:$16 sps:$4 sm:$0xff]  }
 0x320   :  { %v811_v24 = vmul.f32 0.2, %v803_v21  ;;  %v757_v25 = vadd.f32 %v3180_v22, %v2888_v6  ;;  %v819_v31 = vrot.slane %v4123_v26, 1  ;;  %v834_v41 = vpack.c.bf16 %v4123_v26, %v4125_v28  ;;  %v3432_v6 = vld [vmem:[%s4817_s7 + $0x2d0] ss:$8 sps:$4 sm:$0xff]  }
 0x321   :  { %v827_v16 = vrot.slane %v4123_v26, 2  ;;  %v3450_v22 = vld [vmem:[%s4820_s9 + $0xe0] ss:$16 sps:$4 sm:$0xff]  }
 0x322   :  { %v806_v27 = vadd.f32 %v3234_v5, %v757_v25  ;;  %v815_v29 = vmax.f32 %v803_v21, %v811_v24  ;;  %v821_v42 = vsel %vm240_vm0, %v817_v33, %v819_v31  ;;  %v823_v43 = vsel %vm240_vm0, %v819_v31, %v817_v33  ;;  %v3434_v5 = vld [vmem:[%s4817_s7 + $0x2d4] ss:$8 sps:$4 sm:$0xff]   ;;  %v3453_v24 = vld [vmem:[%s4820_s9 + $0x2e0] ss:$16 sps:$4 sm:$0xff]  }
 0x323   :  { %v836_v51 = vpack.c.bf16 %v823_v43, %v821_v42  ;;  %v830_v19 = vsel %vm829_vm2, %v825_v17, %v827_v16  ;;  %v832_v20 = vsel %vm829_vm2, %v827_v16, %v825_v17  ;;  %v3455_v25 = vld [vmem:[%s4820_s9 + $0x2e4] ss:$16 sps:$4 sm:$0xff]   ;;  %v3456_v26 = vld [vmem:[%s4820_s9 + $0xc0] ss:$16 sps:$4 sm:$0xff]  }
 0x324   :  { %v812_v30 = vmul.f32 0.2, %v806_v27  ;;  %v818_v34 = vrot.slane %v815_v29, 1  ;;  %v826_v39 = vrot.slane %v815_v29, 2  ;;  %v838_v21 = vpack.c.bf16 %v832_v20, %v830_v19  ;;  %v3459_v28 = vld [vmem:[%s4820_s9 + $0x2c0] ss:$16 sps:$4 sm:$0xff]  }
 0x325   :  { %v3462_v31 = vld [vmem:[%s4820_s9 + $0xa0] ss:$16 sps:$4 sm:$0xff]   ;;  %v3482_v43 = vld [vmem:[%s4820_s9 + $0x44] ss:$16 sps:$4 sm:$0xff]  }
 0x326   :  { %v816_v32 = vmax.f32 %v806_v27, %v812_v30  ;;  %v3458_v27 = vld [vmem:[%s4820_s9 + $0xc4] ss:$16 sps:$4 sm:$0xff]   ;;  %v3465_v33 = vld [vmem:[%s4820_s9 + $0x2a0] ss:$16 sps:$4 sm:$0xff]  }
 0x327   :  { %v3464_v30 = vld [vmem:[%s4820_s9 + $0xa4] ss:$16 sps:$4 sm:$0xff]   ;;  %v3477_v42 = vld [vmem:[%s4820_s9 + $0x260] ss:$16 sps:$4 sm:$0xff]  }
 0x328   :  { %v835_v35 = vpack.c.bf16 %v816_v32, %v815_v29  ;;  %v820_v38 = vrot.slane %v816_v32, 1  ;;  %v828_v40 = vrot.slane %v816_v32, 2  ;;  %v3461_v29 = vld [vmem:[%s4820_s9 + $0x2c4] ss:$16 sps:$4 sm:$0xff]   ;;  %v3534_v16 = vld [vmem:[%s4820_s9 + $0x120] ss:$16 sps:$4 sm:$0xff]  }
 0x329   :  { %v3467_v32 = vld [vmem:[%s4820_s9 + $0x2a4] ss:$16 sps:$4 sm:$0xff]   ;;  %v3540_v20 = vld [vmem:[%s4820_s9 + $0x100] ss:$16 sps:$4 sm:$0xff]  }
 0x32a   :  { %1460 = vmatprep.mubr.bf16.mxu0 %v835_v35  ;;  %v822_v44 = vsel %vm240_vm0, %v818_v34, %v820_v38  ;;  %v824_v45 = vsel %vm240_vm0, %v820_v38, %v818_v34  ;;  %v831_v46 = vsel %vm829_vm2, %v826_v39, %v828_v40  ;;  %v833_v47 = vsel %vm829_vm2, %v828_v40, %v826_v39  ;;  %v3470_v34 = vld [vmem:[%s4820_s9 + $0x84] ss:$16 sps:$4 sm:$0xff]   ;;  %v3471_v38 = vld [vmem:[%s4820_s9 + $0x280] ss:$16 sps:$4 sm:$0xff]  }
 0x32b   :  { %1461 = vmatmul.mubr.bf16.vlgmr.msra.gmra.mxu0 %v834_v41  ;;  %v837_v49 = vpack.c.bf16 %v824_v45, %v822_v44  ;;  %v839_v50 = vpack.c.bf16 %v833_v47, %v831_v46  ;;  %v3473_v35 = vld [vmem:[%s4820_s9 + $0x284] ss:$16 sps:$4 sm:$0xff]   ;;  %v3474_v41 = vld [vmem:[%s4820_s9 + $0x60] ss:$16 sps:$4 sm:$0xff]  }
 0x32c   :  { %1515 = vmatpush1.bf16.msra.mxu0 %v3402_v36  ;;  %v3468_v36 = vld [vmem:[%s4820_s9 + $0x80] ss:$16 sps:$4 sm:$0xff]   ;;  %v3476_v39 = vld [vmem:[%s4820_s9 + $0x64] ss:$16 sps:$4 sm:$0xff]  }
 0x32d   :  { %1503 = vmatprep.mubr.bf16.mxu1 %v837_v49  ;;  %1546 = vmatprep.mubr.bf16.mxu0 %v839_v50  ;;  %v3479_v40 = vld [vmem:[%s4820_s9 + $0x264] ss:$16 sps:$4 sm:$0xff]   ;;  %v3480_v45 = vld [vmem:[%s4820_s9 + $0x40] ss:$16 sps:$4 sm:$0xff]  }
 0x32e   :  { %1504 = vmatmul.mubr.bf16.vlgmr.msra.gmra.mxu1 %v836_v51  ;;  %1516 = vmatprep.subr.bf16.mxu0 %v3407_v48  ;;  %v3485_v44 = vld [vmem:[%s4820_s9 + $0x244] ss:$16 sps:$4 sm:$0xff]   ;;  %v3483_v46 = vld [vmem:[%s4820_s9 + $0x240] ss:$16 sps:$4 sm:$0xff]  }
 0x32f   :  { %2412 = vmatpush1.bf16.msra.mxu1 %v3450_v22  ;;  %v3488_v47 = vld [vmem:[%s4820_s9 + $0x24] ss:$16 sps:$4 sm:$0xff]   ;;  %v3486_v49 = vld [vmem:[%s4820_s9 + $0x20] ss:$16 sps:$4 sm:$0xff]  }
 0x330   :  { %1517 = vmatpush1.bf16.msra.mxu0 %v3405_v52  ;;  %2413 = vmatprep.subr.bf16.mxu1 %v3458_v27  ;;  %v3491_v48 = vld [vmem:[%s4820_s9 + $0x224] ss:$16 sps:$4 sm:$0xff]   ;;  %v3489_v50 = vld [vmem:[%s4820_s9 + $0x220] ss:$16 sps:$4 sm:$0xff]  }
 0x331   :  { %1518 = vmatprep.subr.bf16.mxu0 %v3410_v53  ;;  %v3494_v51 = vld [vmem:[%s4820_s9 + $0x4] ss:$16 sps:$4 sm:$0xff]   ;;  %v3492_v52 = vld [vmem:[%s4820_s9] ss:$16 sps:$4 sm:$0xff]  }
 0x332   :  { %v3497_v53 = vld [vmem:[%s4820_s9 + $0x204] ss:$16 sps:$4 sm:$0xff]   ;;  %v936_v27 = vld [vmem:[%s4821_s8] sm:$0x3] }
 0x333   :  { %2414 = vmatpush1.bf16.msra.mxu1 %v3456_v26  ;;  %v3539_v17 = vld [vmem:[%s4820_s9 + $0x324] ss:$16 sps:$4 sm:$0xff]   ;;  %v4442_v26 = vsub.s32 0, %v3796_v37 }
 0x334   :  { %1519 = vmatpush1.bf16.msra.mxu0 %v3408_v54  ;;  %2415 = vmatprep.subr.bf16.mxu1 %v3464_v30  ;;  %v3495_v54 = vld [vmem:[%s4820_s9 + $0x200] ss:$16 sps:$4 sm:$0xff]   ;;  %v3542_v19 = vld [vmem:[%s4820_s9 + $0x104] ss:$16 sps:$4 sm:$0xff]  }
 0x335   :  { %1520 = vmatprep.subr.bf16.mxu0 %v3413_v55  ;;  %v3500_v55 = vld [vmem:[%s4820_s9 + $0x1e4] ss:$16 sps:$4 sm:$0xff]  }
 0x336   :  { %v3545_v22 = vld [vmem:[%s4820_s9 + $0x304] ss:$16 sps:$4 sm:$0xff]  }
 0x337   :  { %2416 = vmatpush1.bf16.msra.mxu1 %v3462_v31  ;;  %v941_v31 = vrot.slane %v936_v27, %v4442_v26 }
 0x338   :  { %1521 = vmatpush1.bf16.msra.mxu0 %v3411_v56  ;;  %2417 = vmatprep.subr.bf16.mxu1 %v3470_v34  ;;  %v3503_v56 = vld [vmem:[%s4820_s9 + $0x3e4] ss:$16 sps:$4 sm:$0xff]  }
 0x339   :  { %1522 = vmatprep.subr.bf16.mxu0 %v3416_v57  ;;  %v3498_v57 = vld [vmem:[%s4820_s9 + $0x1e0] ss:$16 sps:$4 sm:$0xff]  }
 0x33b   :  { %2418 = vmatpush1.bf16.msra.mxu1 %v3468_v36 }
 0x33c   :  { %1523 = vmatpush1.bf16.msra.mxu0 %v3414_v58  ;;  %2419 = vmatprep.subr.bf16.mxu1 %v3476_v39  ;;  %v3501_v58 = vld [vmem:[%s4820_s9 + $0x3e0] ss:$16 sps:$4 sm:$0xff]  }
 0x33d   :  { %1524 = vmatprep.subr.bf16.mxu0 %v3419_v59  ;;  %v3506_v59 = vld [vmem:[%s4820_s9 + $0x1c4] ss:$16 sps:$4 sm:$0xff]  }
 0x33f   :  { %2420 = vmatpush1.bf16.msra.mxu1 %v3474_v41 }
 0x340   :  { %1525 = vmatpush1.bf16.msra.mxu0 %v3417_v60  ;;  %2421 = vmatprep.subr.bf16.mxu1 %v3482_v43  ;;  %v3509_v60 = vld [vmem:[%s4820_s9 + $0x3c4] ss:$16 sps:$4 sm:$0xff]  }
 0x341   :  { %1526 = vmatprep.subr.bf16.mxu0 %v3422_v61  ;;  %v3504_v61 = vld [vmem:[%s4820_s9 + $0x1c0] ss:$16 sps:$4 sm:$0xff]  }
 0x343   :  { %2422 = vmatpush1.bf16.msra.mxu1 %v3480_v45  ;;  %v1558_v45 = vand.u32 7, %v3796_v37 }
 0x344   :  { %1527 = vmatpush1.bf16.msra.mxu0 %v3420_v62  ;;  %2423 = vmatprep.subr.bf16.mxu1 %v3488_v47  ;;  %v3507_v62 = vld [vmem:[%s4820_s9 + $0x3c0] ss:$16 sps:$4 sm:$0xff]  }
 0x345   :  { %1528 = vmatprep.subr.bf16.mxu0 %v3425_v63  ;;  %v3512_v63 = vld [vmem:[%s4820_s9 + $0x1a4] ss:$16 sps:$4 sm:$0xff]   ;;  %vm4454_vm3 = vcmp.eq.s32.totalorder %v1558_v45, 1  ;;  %vm4463_vm6 = vcmp.eq.s32.totalorder %v1558_v45, 0 }
 0x347   :  { %2424 = vmatpush1.bf16.msra.mxu1 %v3486_v49 }
 0x348   :  { %1529 = vmatpush1.bf16.msra.mxu0 %v3423_v0  ;;  %2425 = vmatprep.subr.bf16.mxu1 %v3494_v51  ;;  %v3510_v0 = vld [vmem:[%s4820_s9 + $0x1a0] ss:$16 sps:$4 sm:$0xff]  }
 0x349   :  { %1530 = vmatprep.subr.bf16.mxu0 %v3428_v1  ;;  %v3515_v1 = vld [vmem:[%s4820_s9 + $0x3a4] ss:$16 sps:$4 sm:$0xff]  }
 0x34b   :  { %2426 = vmatpush1.bf16.msra.mxu1 %v3492_v52 }
 0x34c   :  { %1531 = vmatpush2.bf16.msra.mxu0 %v3426_v2  ;;  %2427 = vmatprep.subr.bf16.mxu1 %v3500_v55  ;;  %v3513_v2 = vld [vmem:[%s4820_s9 + $0x3a0] ss:$16 sps:$4 sm:$0xff]  }
 0x34d   :  { %1532 = vmatprep.subr.bf16.mxu0 %v3431_v3  ;;  %v3518_v3 = vld [vmem:[%s4820_s9 + $0x184] ss:$16 sps:$4 sm:$0xff]  }
 0x34f   :  { %2428 = vmatpush2.bf16.msra.mxu1 %v3498_v57 }
 0x350   :  { %1533 = vmatpush2.bf16.msra.mxu0 %v3429_v4  ;;  %2429 = vmatprep.subr.bf16.mxu1 %v3506_v59  ;;  %v3516_v4 = vld [vmem:[%s4820_s9 + $0x180] ss:$16 sps:$4 sm:$0xff]   ;;  %v19_v59 = vstv %s4824_s12 }
 0x351   :  { %1534 = vmatprep.subr.bf16.mxu0 %v3434_v5  ;;  %v3521_v5 = vld [vmem:[%s4820_s9 + $0x384] ss:$16 sps:$4 sm:$0xff]   ;;  %20 = vst [vmem:[#allocation2] sm:$0x1] %v19_v59 }
 0x353   :  { %2430 = vmatpush2.bf16.msra.mxu1 %v3504_v61 }
 0x354   :  { %1535 = vmatpush2.bf16.msra.mxu0 %v3432_v6  ;;  %2431 = vmatprep.subr.bf16.mxu1 %v3512_v63  ;;  %v3519_v6 = vld [vmem:[%s4820_s9 + $0x380] ss:$16 sps:$4 sm:$0xff]  }
 0x355   :  { %1536 = vmatprep.subr.bf16.mxu0 %v3437_v7  ;;  %v3524_v7 = vld [vmem:[%s4820_s9 + $0x164] ss:$16 sps:$4 sm:$0xff]  }
 0x357   :  { %2432 = vmatpush2.bf16.msra.mxu1 %v3510_v0 }
 0x358   :  { %1537 = vmatpush2.bf16.msra.mxu0 %v3435_v8  ;;  %2433 = vmatprep.subr.bf16.mxu1 %v3518_v3  ;;  %v3522_v8 = vld [vmem:[%s4820_s9 + $0x160] ss:$16 sps:$4 sm:$0xff]  }
 0x359   :  { %1538 = vmatprep.subr.bf16.mxu0 %v3440_v9  ;;  %v3527_v9 = vld [vmem:[%s4820_s9 + $0x364] ss:$16 sps:$4 sm:$0xff]  }
 0x35b   :  { %2434 = vmatpush2.bf16.msra.mxu1 %v3516_v4 }
 0x35c   :  { %1539 = vmatpush2.bf16.msra.mxu0 %v3438_v10  ;;  %2435 = vmatprep.subr.bf16.mxu1 %v3524_v7  ;;  %v3525_v10 = vld [vmem:[%s4820_s9 + $0x360] ss:$16 sps:$4 sm:$0xff]  }
 0x35d   :  { %1540 = vmatprep.subr.bf16.mxu0 %v3443_v11  ;;  %v3530_v11 = vld [vmem:[%s4820_s9 + $0x144] ss:$16 sps:$4 sm:$0xff]  }
 0x35f   :  { %2436 = vmatpush2.bf16.msra.mxu1 %v3522_v8 }
 0x360   :  { %1541 = vmatpush2.bf16.msra.mxu0 %v3441_v12  ;;  %v3528_v12 = vld [vmem:[%s4820_s9 + $0x140] ss:$16 sps:$4 sm:$0xff]   ;;  %2437 = vmatprep.subr.bf16.mxu1 %v3530_v11 }
 0x361   :  { %1542 = vmatprep.subr.bf16.mxu0 %v3446_v13  ;;  %v3533_v13 = vld [vmem:[%s4820_s9 + $0x344] ss:$16 sps:$4 sm:$0xff]  }
 0x363   :  { %2438 = vmatpush2.bf16.msra.mxu1 %v3528_v12 }
 0x364   :  { %1543 = vmatpush2.bf16.msra.mxu0 %v3444_v14  ;;  %v3531_v14 = vld [vmem:[%s4820_s9 + $0x340] ss:$16 sps:$4 sm:$0xff]  }
 0x365   :  { %1544 = vmatprep.subr.bf16.mxu0 %v3449_v15  ;;  %v3536_v15 = vld [vmem:[%s4820_s9 + $0x124] ss:$16 sps:$4 sm:$0xff]  }
 0x366   :  { %2439 = vmatprep.subr.bf16.mxu1 %v3536_v15 }
 0x367   :  { %2440 = vmatpush2.bf16.msra.mxu1 %v3534_v16 }
 0x368   :  { %1545 = vmatpush2.bf16.msra.mxu0 %v3447_v18  ;;  %v3537_v18 = vld [vmem:[%s4820_s9 + $0x320] ss:$16 sps:$4 sm:$0xff]   ;;  %2441 = vmatprep.subr.bf16.mxu1 %v3542_v19 }
 0x369   :  { %2454 = vmatprep.subr.bf16.mxu0 %v3455_v25 }
 0x36b   :  { %1547 = vmatmul.mubr.bf16.vlgmr.msra.gmra.mxu0 %v838_v21  ;;  %2442 = vmatpush2.bf16.msra.mxu1 %v3540_v20  ;;  %v3543_v21 = vld [vmem:[%s4820_s9 + $0x300] ss:$16 sps:$4 sm:$0xff]  }
 0x36c   :  { %2455 = vmatpush1.bf16.msra.mxu0 %v3453_v24  ;;  %2497 = vmatprep.subr.bf16.mxu1 %v3548_v23  ;;  %v3551_v24 = vld [vmem:[%s4820_s9 + $0x2ec] ss:$16 sps:$4 sm:$0xff]  }
 0x36d   :  { %2456 = vmatprep.subr.bf16.mxu0 %v3461_v29 }
 0x370   :  { %2457 = vmatpush1.bf16.msra.mxu0 %v3459_v28  ;;  %v4448_v28 = vsub.s32 1, %v3796_v37 }
 0x371   :  { %2458 = vmatprep.subr.bf16.mxu0 %v3467_v32 }
 0x372   :  { %v945_v32 = vrot.slane %v936_v27, %v4448_v28 }
 0x374   :  { %2459 = vmatpush1.bf16.msra.mxu0 %v3465_v33 }
 0x375   :  { %2460 = vmatprep.subr.bf16.mxu0 %v3473_v35 }
 0x378   :  { %2461 = vmatpush1.bf16.msra.mxu0 %v3471_v38 }
 0x379   :  { %2462 = vmatprep.subr.bf16.mxu0 %v3479_v40  ;;  %v1557_v40 = vadd.s32 8, %v3796_v37 }
 0x37c   :  { %2463 = vmatpush1.bf16.msra.mxu0 %v3477_v42 }
 0x37d   :  { %2464 = vmatprep.subr.bf16.mxu0 %v3485_v44 }
 0x380   :  { %2465 = vmatpush1.bf16.msra.mxu0 %v3483_v46 }
 0x381   :  { %2466 = vmatprep.subr.bf16.mxu0 %v3491_v48 }
 0x384   :  { %2467 = vmatpush1.bf16.msra.mxu0 %v3489_v50  ;;  %v1559_v50 = vand.u32 7, %v1557_v40 }
 0x385   :  { %2468 = vmatprep.subr.bf16.mxu0 %v3497_v53 }
 0x386   :  { %vm4459_vm5 = vcmp.eq.s32.totalorder %v1559_v50, 1  ;;  %vm4467_vm7 = vcmp.eq.s32.totalorder %v1559_v50, 0  ;;  %v3549_v50 = vld [vmem:[%s4820_s9 + $0x2e8] ss:$16 sps:$4 sm:$0xff]  }
 0x388   :  { %2469 = vmatpush1.bf16.msra.mxu0 %v3495_v54 }
 0x389   :  { %2470 = vmatprep.subr.bf16.mxu0 %v3503_v56  ;;  %v3558_v56 = vld [vmem:[%s4820_s9 + $0xa8] ss:$16 sps:$4 sm:$0xff]  }
 0x38c   :  { %2471 = vmatpush2.bf16.msra.mxu0 %v3501_v58  ;;  %v3566_v58 = vld [vmem:[%s4820_s9 + $0x8c] ss:$16 sps:$4 sm:$0xff]  }
 0x38d   :  { %2472 = vmatprep.subr.bf16.mxu0 %v3509_v60 }
 0x390   :  { %2473 = vmatpush2.bf16.msra.mxu0 %v3507_v62 }
 0x391   :  { %2474 = vmatprep.subr.bf16.mxu0 %v3515_v1 }
 0x394   :  { %2475 = vmatpush2.bf16.msra.mxu0 %v3513_v2 }
 0x395   :  { %2476 = vmatprep.subr.bf16.mxu0 %v3521_v5 }
 0x398   :  { %2477 = vmatpush2.bf16.msra.mxu0 %v3519_v6 }
 0x399   :  { %2478 = vmatprep.subr.bf16.mxu0 %v3527_v9 }
 0x39c   :  { %2479 = vmatpush2.bf16.msra.mxu0 %v3525_v10 }
 0x39d   :  { %2480 = vmatprep.subr.bf16.mxu0 %v3533_v13 }
 0x3a0   :  { %2481 = vmatpush2.bf16.msra.mxu0 %v3531_v14 }
 0x3a1   :  { %2482 = vmatprep.subr.bf16.mxu0 %v3539_v17 }
 0x3a4   :  { %2483 = vmatpush2.bf16.msra.mxu0 %v3537_v18 }
 0x3a5   :  { %2484 = vmatprep.subr.bf16.mxu0 %v3545_v22 }
 0x3a8   :  { %2485 = vmatpush2.bf16.msra.mxu0 %v3543_v21 }
 0x3a9   :  { %2540 = vmatprep.subr.bf16.mxu0 %v3551_v24 }
 0x3eb   :  { %v1462_v25 = vpop.f32.mrf.mxu0 }
 0x3ec   :  { %v1463_v35 = vadd.f32 %v1462_v25, %v941_v31 }
 0x3ed   :  { %v1464_v29 = vpop.f32.mrf.mxu0 }
 0x3ee   :  { %v1505_v30 = vpop.f32.mrf.mxu1  ;;  %v1465_v36 = vadd.f32 %v1464_v29, %v945_v32 }
 0x3ef   :  { %v1466_v33 = vpop.f32.mrf.mxu0  ;;  %v1506_v42 = vadd.f32 %v1505_v30, %v1463_v35 }
 0x3f0   :  { %v1507_v34 = vpop.f32.mrf.mxu1  ;;  %v1467_v41 = vadd.f32 %v1466_v33, %v941_v31 }
 0x3f1   :  { %v1468_v38 = vpop.f32.mrf.mxu0  ;;  %v1508_v46 = vadd.f32 %v1507_v34, %v1465_v36 }
 0x3f2   :  { %v1509_v39 = vpop.f32.mrf.mxu1  ;;  %v1469_v44 = vadd.f32 %v1468_v38, %v945_v32 }
 0x3f3   :  { %v1510_v51 = vadd.f32 %v1509_v39, %v1467_v41 }
 0x3f4   :  { %v1511_v47 = vpop.f32.mrf.mxu1 }
 0x3f5   :  { %v1512_v54 = vadd.f32 %v1511_v47, %v1469_v44 }
 0x42b   :  { %v1548_v43 = vpop.f32.mrf.mxu0 }
 0x42c   :  { %v1549_v48 = vadd.f32 %v1548_v43, %v1506_v42  ;;  %v3546_v42 = vld [vmem:[%s4820_s9 + $0xe8] ss:$16 sps:$4 sm:$0xff]  }
 0x42d   :  { %v1550_v49 = vpop.f32.mrf.mxu0 }
 0x42e   :  { %v1551_v52 = vadd.f32 %v1550_v49, %v1508_v46  ;;  %v1562_v57 = vrot.slane %v1549_v48, 1  ;;  %v1580_v62 = vrot.slane %v1549_v48, 7  ;;  %v3554_v46 = vld [vmem:[%s4820_s9 + $0xcc] ss:$16 sps:$4 sm:$0xff]  }
 0x42f   :  { %v1552_v53 = vpop.f32.mrf.mxu0 }
 0x430   :  { %v1553_v55 = vadd.f32 %v1552_v53, %v1510_v51  ;;  %v1563_v2 = vrot.slane %v1551_v52, 1  ;;  %v1581_v3 = vrot.slane %v1551_v52, 7  ;;  %v3557_v53 = vld [vmem:[%s4820_s9 + $0x2cc] ss:$16 sps:$4 sm:$0xff]  }
 0x431   :  { %v1554_v61 = vpop.f32.mrf.mxu0 }
 0x432   :  { %v1564_v63 = vrot.slane %v1553_v55, 1  ;;  %v1582_v0 = vrot.slane %v1553_v55, 7  ;;  %v1555_v1 = vadd.f32 %v1554_v61, %v1512_v54  ;;  %v3560_v54 = vld [vmem:[%s4820_s9 + $0xac] ss:$16 sps:$4 sm:$0xff]   ;;  %v3561_v61 = vld [vmem:[%s4820_s9 + $0x2a8] ss:$16 sps:$4 sm:$0xff]  }
 0x434   :  { %v1566_v4 = vsel %vm240_vm0, %v1562_v57, %v1564_v63  ;;  %v1568_v5 = vsel %vm240_vm0, %v1564_v63, %v1562_v57  ;;  %v1585_v6 = vsel %vm1584_vm4, %v1580_v62, %v1582_v0  ;;  %v1587_v7 = vsel %vm1584_vm4, %v1582_v0, %v1580_v62  ;;  %v3563_v57 = vld [vmem:[%s4820_s9 + $0x2ac] ss:$16 sps:$4 sm:$0xff]   ;;  %v3564_v62 = vld [vmem:[%s4820_s9 + $0x88] ss:$16 sps:$4 sm:$0xff]  }
 0x435   :  { %v1574_v8 = vsel %vm4454_vm3, -inf, %v1566_v4  ;;  %v1576_v9 = vsel %vm4459_vm5, -inf, %v1568_v5  ;;  %v1593_v10 = vsel %vm4463_vm6, -inf, %v1587_v7  ;;  %v1595_v11 = vsel %vm4467_vm7, -inf, %v1585_v6  ;;  %v3569_v63 = vld [vmem:[%s4820_s9 + $0x28c] ss:$16 sps:$4 sm:$0xff]  }
 0x436   :  { %v1597_v12 = vmax.f32 %v1574_v8, %v1593_v10  ;;  %v1599_v13 = vmax.f32 %v1576_v9, %v1595_v11  ;;  %v1565_v14 = vrot.slane %v1555_v1, 1  ;;  %v1583_v15 = vrot.slane %v1555_v1, 7  ;;  %v3572_v0 = vld [vmem:[%s4820_s9 + $0x6c] ss:$16 sps:$4 sm:$0xff]   ;;  %v3573_v5 = vld [vmem:[%s4820_s9 + $0x268] ss:$16 sps:$4 sm:$0xff]  }
 0x437   :  { %v3578_v4 = vld [vmem:[%s4820_s9 + $0x4c] ss:$16 sps:$4 sm:$0xff]   ;;  %v3576_v6 = vld [vmem:[%s4820_s9 + $0x48] ss:$16 sps:$4 sm:$0xff]  }
 0x438   :  { %v1603_v16 = vmax.f32 %v1553_v55, %v1599_v13  ;;  %v1567_v17 = vsel %vm240_vm0, %v1563_v2, %v1565_v14  ;;  %v1569_v18 = vsel %vm240_vm0, %v1565_v14, %v1563_v2  ;;  %v1586_v19 = vsel %vm1584_vm4, %v1581_v3, %v1583_v15  ;;  %v3555_v55 = vld [vmem:[%s4820_s9 + $0x2c8] ss:$16 sps:$4 sm:$0xff]   ;;  %v3581_v7 = vld [vmem:[%s4820_s9 + $0x24c] ss:$16 sps:$4 sm:$0xff]  }
 0x439   :  { %v1577_v20 = vsel %vm4459_vm5, -inf, %v1569_v18  ;;  %v1588_v21 = vsel %vm1584_vm4, %v1583_v15, %v1581_v3  ;;  %v1596_v22 = vsel %vm4467_vm7, -inf, %v1586_v19  ;;  %v1575_v23 = vsel %vm4454_vm3, -inf, %v1567_v17  ;;  %v3570_v2 = vld [vmem:[%s4820_s9 + $0x68] ss:$16 sps:$4 sm:$0xff]  }
 0x43a   :  { %v1607_v24 = vmax.f32 %v1603_v16, 0.0  ;;  %v1600_v25 = vmax.f32 %v1577_v20, %v1596_v22  ;;  %v1594_v27 = vsel %vm4463_vm6, -inf, %v1588_v21  ;;  %v1601_v29 = vmax.f32 %v1549_v48, %v1597_v12  ;;  %v3575_v3 = vld [vmem:[%s4820_s9 + $0x26c] ss:$16 sps:$4 sm:$0xff]   ;;  %v3579_v9 = vld [vmem:[%s4820_s9 + $0x248] ss:$16 sps:$4 sm:$0xff]  }
 0x43b   :  { %v1598_v30 = vmax.f32 %v1575_v23, %v1594_v27  ;;  %v3584_v8 = vld [vmem:[%s4820_s9 + $0x2c] ss:$16 sps:$4 sm:$0xff]   ;;  %v3582_v10 = vld [vmem:[%s4820_s9 + $0x28] ss:$16 sps:$4 sm:$0xff]  }
 0x43c   :  { %v1604_v31 = vmax.f32 %v1555_v1, %v1600_v25  ;;  %v1605_v32 = vmax.f32 %v1601_v29, 0.0  ;;  %v1611_v34 = vrot.slane %v1607_v24, 1  ;;  %v3567_v1 = vld [vmem:[%s4820_s9 + $0x288] ss:$16 sps:$4 sm:$0xff]   ;;  %v3587_v11 = vld [vmem:[%s4820_s9 + $0x22c] ss:$16 sps:$4 sm:$0xff]  }
 0x43d   :  { %v1602_v33 = vmax.f32 %v1551_v52, %v1598_v30  ;;  %v3552_v52 = vld [vmem:[%s4820_s9 + $0xc8] ss:$16 sps:$4 sm:$0xff]   ;;  %v3590_v12 = vld [vmem:[%s4820_s9 + $0xc] ss:$16 sps:$4 sm:$0xff]  }
 0x43e   :  { %v1608_v35 = vmax.f32 %v1604_v31, 0.0  ;;  %v1609_v36 = vrot.slane %v1605_v32, 1  ;;  %v4506_v43 = vpack.c.bf16 %v1607_v24, %v1605_v32  ;;  %v3585_v13 = vld [vmem:[%s4820_s9 + $0x228] ss:$16 sps:$4 sm:$0xff]   ;;  %v3593_v15 = vld [vmem:[%s4820_s9 + $0x20c] ss:$16 sps:$4 sm:$0xff]  }
 0x43f   :  { %v1606_v38 = vmax.f32 %v1602_v33, 0.0  ;;  %v3588_v14 = vld [vmem:[%s4820_s9 + $0x8] ss:$16 sps:$4 sm:$0xff]   ;;  %v3596_v16 = vld [vmem:[%s4820_s9 + $0x1ec] ss:$16 sps:$4 sm:$0xff]  }
 0x440   :  { %v1612_v39 = vrot.slane %v1608_v35, 1  ;;  %v1613_v44 = vsel %vm240_vm0, %v1609_v36, %v1611_v34  ;;  %v1615_v45 = vsel %vm240_vm0, %v1611_v34, %v1609_v36  ;;  %v3591_v17 = vld [vmem:[%s4820_s9 + $0x208] ss:$16 sps:$4 sm:$0xff]   ;;  %v3599_v19 = vld [vmem:[%s4820_s9 + $0x3ec] ss:$16 sps:$4 sm:$0xff]  }
 0x441   :  { %v1610_v40 = vrot.slane %v1606_v38, 1  ;;  %v1618_v41 = vpack.c.bf16 %v1608_v35, %v1606_v38  ;;  %v4523_v51 = vpack.c.bf16 %v1615_v45, %v1613_v44  ;;  %v3594_v18 = vld [vmem:[%s4820_s9 + $0x1e8] ss:$16 sps:$4 sm:$0xff]   ;;  %v3602_v20 = vld [vmem:[%s4820_s9 + $0x1cc] ss:$16 sps:$4 sm:$0xff]  }
 0x442   :  { %v3597_v21 = vld [vmem:[%s4820_s9 + $0x3e8] ss:$16 sps:$4 sm:$0xff]   ;;  %v3605_v23 = vld [vmem:[%s4820_s9 + $0x3cc] ss:$16 sps:$4 sm:$0xff]  }
 0x443   :  { %2443 = vmatprep.mubr.bf16.mxu1 %v1618_v41  ;;  %v1614_v47 = vsel %vm240_vm0, %v1610_v40, %v1612_v39  ;;  %v1616_v48 = vsel %vm240_vm0, %v1612_v39, %v1610_v40  ;;  %v3600_v22 = vld [vmem:[%s4820_s9 + $0x1c8] ss:$16 sps:$4 sm:$0xff]   ;;  %v3608_v24 = vld [vmem:[%s4820_s9 + $0x1ac] ss:$16 sps:$4 sm:$0xff]  }
 0x444   :  { %2444 = vmatmul.mubr.bf16.vlgmr.msra.gmra.mxu1 %v4506_v43  ;;  %v1620_v49 = vpack.c.bf16 %v1616_v48, %v1614_v47  ;;  %v3603_v25 = vld [vmem:[%s4820_s9 + $0x3c8] ss:$16 sps:$4 sm:$0xff]   ;;  %v3611_v29 = vld [vmem:[%s4820_s9 + $0x3ac] ss:$16 sps:$4 sm:$0xff]  }
 0x445   :  { %2498 = vmatpush1.bf16.msra.mxu1 %v3546_v42  ;;  %2529 = vmatprep.mubr.bf16.mxu1 %v1618_v41  ;;  %v3606_v27 = vld [vmem:[%s4820_s9 + $0x1a8] ss:$16 sps:$4 sm:$0xff]   ;;  %v3614_v30 = vld [vmem:[%s4820_s9 + $0x18c] ss:$16 sps:$4 sm:$0xff]  }
 0x446   :  { %2486 = vmatprep.mubr.bf16.mxu0 %v1620_v49  ;;  %2499 = vmatprep.subr.bf16.mxu1 %v3554_v46  ;;  %v3609_v31 = vld [vmem:[%s4820_s9 + $0x3a8] ss:$16 sps:$4 sm:$0xff]   ;;  %v3617_v33 = vld [vmem:[%s4820_s9 + $0x38c] ss:$16 sps:$4 sm:$0xff]  }
 0x447   :  { %2487 = vmatmul.mubr.bf16.vlgmr.msra.gmra.mxu0 %v4523_v51  ;;  %v3612_v32 = vld [vmem:[%s4820_s9 + $0x188] ss:$16 sps:$4 sm:$0xff]   ;;  %v3620_v34 = vld [vmem:[%s4820_s9 + $0x16c] ss:$16 sps:$4 sm:$0xff]  }
 0x448   :  { %2541 = vmatpush1.bf16.msra.mxu0 %v3549_v50  ;;  %2572 = vmatprep.mubr.bf16.mxu0 %v1620_v49  ;;  %v3615_v35 = vld [vmem:[%s4820_s9 + $0x388] ss:$16 sps:$4 sm:$0xff]   ;;  %v3623_v38 = vld [vmem:[%s4820_s9 + $0x36c] ss:$16 sps:$4 sm:$0xff]  }
 0x449   :  { %2500 = vmatpush1.bf16.msra.mxu1 %v3552_v52  ;;  %2542 = vmatprep.subr.bf16.mxu0 %v3557_v53  ;;  %v3618_v36 = vld [vmem:[%s4820_s9 + $0x168] ss:$16 sps:$4 sm:$0xff]   ;;  %v3626_v39 = vld [vmem:[%s4820_s9 + $0x14c] ss:$16 sps:$4 sm:$0xff]  }
 0x44a   :  { %2501 = vmatprep.subr.bf16.mxu1 %v3560_v54  ;;  %v3621_v40 = vld [vmem:[%s4820_s9 + $0x368] ss:$16 sps:$4 sm:$0xff]   ;;  %v3629_v42 = vld [vmem:[%s4820_s9 + $0x34c] ss:$16 sps:$4 sm:$0xff]   ;;  %v3648_v54 = vmov 0.0  }
 0x44b   :  { %v3624_v41 = vld [vmem:[%s4820_s9 + $0x148] ss:$16 sps:$4 sm:$0xff]   ;;  %v3632_v44 = vld [vmem:[%s4820_s9 + $0x12c] ss:$16 sps:$4 sm:$0xff]  }
 0x44c   :  { %2543 = vmatpush1.bf16.msra.mxu0 %v3555_v55  ;;  %v3627_v45 = vld [vmem:[%s4820_s9 + $0x348] ss:$16 sps:$4 sm:$0xff]   ;;  %v3635_v47 = vld [vmem:[%s4820_s9 + $0x32c] ss:$16 sps:$4 sm:$0xff]   ;;  %v4709_v55 = vld [vmem:[%s4822_s10] sm:$0xf] }
 0x44d   :  { %2502 = vmatpush1.bf16.msra.mxu1 %v3558_v56  ;;  %2544 = vmatprep.subr.bf16.mxu0 %v3563_v57  ;;  %v3630_v46 = vld [vmem:[%s4820_s9 + $0x128] ss:$16 sps:$4 sm:$0xff]   ;;  %v3638_v48 = vld [vmem:[%s4820_s9 + $0x10c] ss:$16 sps:$4 sm:$0xff]   ;;  %v1754_v56 = vrot.slane %v4709_v55, %v4442_v26 }
 0x44e   :  { %2503 = vmatprep.subr.bf16.mxu1 %v3566_v58  ;;  %v3633_v49 = vld [vmem:[%s4820_s9 + $0x328] ss:$16 sps:$4 sm:$0xff]   ;;  %v3641_v52 = vld [vmem:[%s4820_s9 + $0x30c] ss:$16 sps:$4 sm:$0xff]  }
 0x44f   :  { %v3636_v50 = vld [vmem:[%s4820_s9 + $0x108] ss:$16 sps:$4 sm:$0xff]  }
 0x450   :  { %2545 = vmatpush1.bf16.msra.mxu0 %v3561_v61  ;;  %v3639_v53 = vld [vmem:[%s4820_s9 + $0x308] ss:$16 sps:$4 sm:$0xff]   ;;  %v1758_v61 = vrot.slane %v4709_v55, %v4448_v28 }
 0x451   :  { %2504 = vmatpush1.bf16.msra.mxu1 %v3564_v62  ;;  %2546 = vmatprep.subr.bf16.mxu0 %v3569_v63 }
 0x452   :  { %2505 = vmatprep.subr.bf16.mxu1 %v3572_v0 }
 0x454   :  { %2547 = vmatpush1.bf16.msra.mxu0 %v3567_v1 }
 0x455   :  { %2506 = vmatpush1.bf16.msra.mxu1 %v3570_v2  ;;  %2548 = vmatprep.subr.bf16.mxu0 %v3575_v3 }
 0x456   :  { %2507 = vmatprep.subr.bf16.mxu1 %v3578_v4 }
 0x458   :  { %2549 = vmatpush1.bf16.msra.mxu0 %v3573_v5 }
 0x459   :  { %2508 = vmatpush1.bf16.msra.mxu1 %v3576_v6  ;;  %2550 = vmatprep.subr.bf16.mxu0 %v3581_v7 }
 0x45a   :  { %2509 = vmatprep.subr.bf16.mxu1 %v3584_v8 }
 0x45c   :  { %2551 = vmatpush1.bf16.msra.mxu0 %v3579_v9 }
 0x45d   :  { %2510 = vmatpush1.bf16.msra.mxu1 %v3582_v10  ;;  %2552 = vmatprep.subr.bf16.mxu0 %v3587_v11 }
 0x45e   :  { %2511 = vmatprep.subr.bf16.mxu1 %v3590_v12 }
 0x460   :  { %2553 = vmatpush1.bf16.msra.mxu0 %v3585_v13 }
 0x461   :  { %2512 = vmatpush1.bf16.msra.mxu1 %v3588_v14  ;;  %2554 = vmatprep.subr.bf16.mxu0 %v3593_v15 }
 0x462   :  { %2513 = vmatprep.subr.bf16.mxu1 %v3596_v16 }
 0x464   :  { %2555 = vmatpush1.bf16.msra.mxu0 %v3591_v17 }
 0x465   :  { %2514 = vmatpush2.bf16.msra.mxu1 %v3594_v18  ;;  %2556 = vmatprep.subr.bf16.mxu0 %v3599_v19 }
 0x466   :  { %2515 = vmatprep.subr.bf16.mxu1 %v3602_v20 }
 0x468   :  { %2557 = vmatpush2.bf16.msra.mxu0 %v3597_v21 }
 0x469   :  { %2516 = vmatpush2.bf16.msra.mxu1 %v3600_v22  ;;  %2558 = vmatprep.subr.bf16.mxu0 %v3605_v23 }
 0x46a   :  { %2517 = vmatprep.subr.bf16.mxu1 %v3608_v24 }
 0x46c   :  { %2559 = vmatpush2.bf16.msra.mxu0 %v3603_v25 }
 0x46d   :  { %2518 = vmatpush2.bf16.msra.mxu1 %v3606_v27  ;;  %2560 = vmatprep.subr.bf16.mxu0 %v3611_v29 }
 0x46e   :  { %2519 = vmatprep.subr.bf16.mxu1 %v3614_v30 }
 0x470   :  { %2561 = vmatpush2.bf16.msra.mxu0 %v3609_v31 }
 0x471   :  { %2520 = vmatpush2.bf16.msra.mxu1 %v3612_v32  ;;  %2562 = vmatprep.subr.bf16.mxu0 %v3617_v33 }
 0x472   :  { %2521 = vmatprep.subr.bf16.mxu1 %v3620_v34 }
 0x474   :  { %2563 = vmatpush2.bf16.msra.mxu0 %v3615_v35 }
 0x475   :  { %2522 = vmatpush2.bf16.msra.mxu1 %v3618_v36  ;;  %2564 = vmatprep.subr.bf16.mxu0 %v3623_v38 }
 0x476   :  { %2523 = vmatprep.subr.bf16.mxu1 %v3626_v39 }
 0x478   :  { %2565 = vmatpush2.bf16.msra.mxu0 %v3621_v40 }
 0x479   :  { %2524 = vmatpush2.bf16.msra.mxu1 %v3624_v41  ;;  %2566 = vmatprep.subr.bf16.mxu0 %v3629_v42 }
 0x47a   :  { %2525 = vmatprep.subr.bf16.mxu1 %v3632_v44 }
 0x47c   :  { %2567 = vmatpush2.bf16.msra.mxu0 %v3627_v45 }
 0x47d   :  { %2526 = vmatpush2.bf16.msra.mxu1 %v3630_v46  ;;  %2568 = vmatprep.subr.bf16.mxu0 %v3635_v47 }
 0x47e   :  { %2527 = vmatprep.subr.bf16.mxu1 %v3638_v48 }
 0x480   :  { %2569 = vmatpush2.bf16.msra.mxu0 %v3633_v49 }
 0x481   :  { %2528 = vmatpush2.bf16.msra.mxu1 %v3636_v50  ;;  %2570 = vmatprep.subr.bf16.mxu0 %v3641_v52  ;;  %v4750_v50 = vld [vmem:[%s4823_s13] sm:$0x3]  ;;  %v1761_v52 = vsub.s32 2, %v3796_v37 }
 0x484   :  { %2530 = vmatmul.mubr.bf16.vlgmr.msra.gmra.mxu1 %v4506_v43  ;;  %2571 = vmatpush2.bf16.msra.mxu0 %v3639_v53  ;;  %v1762_v53 = vrot.slane %v4709_v55, %v1761_v52 }
 0x487   :  { %2573 = vmatmul.mubr.bf16.vlgmr.msra.gmra.mxu0 %v4523_v51 }
 0x488   :  { %2724 = vmatprep.mubr.f32.mxu0 %v3648_v54 }
 0x504   :  { %v2445_v57 = vpop.f32.mrf.mxu1 }
 0x505   :  { %v2446_v58 = vadd.f32 %v2445_v57, %v1754_v56 }
 0x506   :  { %v2447_v43 = vpop.f32.mrf.mxu1 }
 0x507   :  { %v2488_v62 = vpop.f32.mrf.mxu0  ;;  %v2448_v2 = vadd.f32 %v2447_v43, %v1758_v61 }
 0x508   :  { %v2449_v63 = vpop.f32.mrf.mxu1  ;;  %v2489_v51 = vadd.f32 %v2488_v62, %v2446_v58 }
 0x509   :  { %v2450_v0 = vadd.f32 %v2449_v63, %v1754_v56  ;;  %v2490_v1 = vpop.f32.mrf.mxu0  ;;  %v1765_v56 = vsub.s32 3, %v3796_v37 }
 0x50a   :  { %v2451_v3 = vpop.f32.mrf.mxu1  ;;  %v2583_v7 = vrot.slane %v2489_v51, 1  ;;  %v2607_v8 = vrot.slane %v2489_v51, 7  ;;  %v2491_v10 = vadd.f32 %v2490_v1, %v2448_v2 }
 0x50b   :  { %v2452_v4 = vadd.f32 %v2451_v3, %v1758_v61  ;;  %v2492_v5 = vpop.f32.mrf.mxu0  ;;  %v1766_v61 = vrot.slane %v4709_v55, %v1765_v56 }
 0x50c   :  { %v2493_v6 = vadd.f32 %v2492_v5, %v2450_v0  ;;  %v2584_v22 = vrot.slane %v2491_v10, 1  ;;  %v2608_v23 = vrot.slane %v2491_v10, 7 }
 0x50d   :  { %v2494_v9 = vpop.f32.mrf.mxu0 }
 0x50e   :  { %v2587_v11 = vrot.slane %v2493_v6, 1  ;;  %v2611_v12 = vrot.slane %v2493_v6, 7  ;;  %v2495_v13 = vadd.f32 %v2494_v9, %v2452_v4 }
 0x510   :  { %v2591_v14 = vsel %vm240_vm0, %v2583_v7, %v2587_v11  ;;  %v2595_v15 = vsel %vm240_vm0, %v2587_v11, %v2583_v7  ;;  %v2615_v16 = vsel %vm1584_vm4, %v2607_v8, %v2611_v12  ;;  %v2619_v17 = vsel %vm1584_vm4, %v2611_v12, %v2607_v8 }
 0x511   :  { %v2599_v18 = vsel %vm4463_vm6, -inf, %v2591_v14  ;;  %v2603_v19 = vsel %vm4467_vm7, -inf, %v2595_v15  ;;  %v2623_v20 = vsel %vm4463_vm6, -inf, %v2619_v17  ;;  %v2627_v21 = vsel %vm4467_vm7, -inf, %v2615_v16 }
 0x512   :  { %v2588_v24 = vrot.slane %v2495_v13, 1  ;;  %v2612_v25 = vrot.slane %v2495_v13, 7  ;;  %v2635_v27 = vmax.f32 %v2603_v19, %v2627_v21  ;;  %v2631_v32 = vmax.f32 %v2599_v18, %v2623_v20 }
 0x514   :  { %v2596_v29 = vsel %vm240_vm0, %v2588_v24, %v2584_v22  ;;  %v2616_v30 = vsel %vm1584_vm4, %v2608_v23, %v2612_v25  ;;  %v2592_v31 = vsel %vm240_vm0, %v2584_v22, %v2588_v24  ;;  %v2620_v36 = vsel %vm1584_vm4, %v2612_v25, %v2608_v23 }
 0x515   :  { %v2604_v33 = vsel %vm4467_vm7, -inf, %v2596_v29  ;;  %v2628_v34 = vsel %vm4467_vm7, -inf, %v2616_v30  ;;  %v2600_v35 = vsel %vm4463_vm6, -inf, %v2592_v31  ;;  %v2624_v39 = vsel %vm4463_vm6, -inf, %v2620_v36 }
 0x516   :  { %v2636_v38 = vmax.f32 %v2604_v33, %v2628_v34  ;;  %v2643_v40 = vmax.f32 %v2493_v6, %v2635_v27  ;;  %v2632_v41 = vmax.f32 %v2600_v35, %v2624_v39  ;;  %v2639_v45 = vmax.f32 %v2489_v51, %v2631_v32 }
 0x518   :  { %v2644_v42 = vmax.f32 %v2495_v13, %v2636_v38  ;;  %v2640_v44 = vmax.f32 %v2491_v10, %v2632_v41  ;;  %v2651_v47 = vmax.f32 %v2643_v40, 0.0  ;;  %v2647_v49 = vmax.f32 %v2639_v45, 0.0 }
 0x51a   :  { %v2652_v46 = vmax.f32 %v2644_v42, 0.0  ;;  %v2648_v48 = vmax.f32 %v2640_v44, 0.0 }
 0x51c   :  { %2688 = vmatprep.subr.mxu0 %v2652_v46 }
 0x51d   :  { %2689 = vmatpush1.msra.mxu0 %v2651_v47 }
 0x51e   :  { %2690 = vmatprep.subr.mxu0 %v2648_v48  ;;  %v2802_v48 = vld [vmem:[%s4825_s11] sm:$0xf] }
 0x51f   :  { %2691 = vmatpush1.msra.mxu0 %v2647_v49  ;;  %v2807_v49 = vrot.slane %v2802_v48, %v4442_v26 }
 0x520   :  { %3137 = vmatmul.mubr.msk.f32.vlgmr.msra.gmra.mxu0 %vm2656_vm8, %v4750_v50 }
 0x521   :  { %2795 = vmatprep.mubr.f32.mxu0 %v3648_v54 }
 0x544   :  { %v2531_v57 = vpop.f32.mrf.mxu1 }
 0x545   :  { %v2532_v58 = vadd.f32 %v2531_v57, %v1762_v53 }
 0x546   :  { %v2533_v43 = vpop.f32.mrf.mxu1 }
 0x547   :  { %v2574_v62 = vpop.f32.mrf.mxu0  ;;  %v2534_v1 = vadd.f32 %v2533_v43, %v1766_v61 }
 0x548   :  { %v2535_v63 = vpop.f32.mrf.mxu1  ;;  %v2575_v51 = vadd.f32 %v2574_v62, %v2532_v58 }
 0x549   :  { %v2536_v0 = vadd.f32 %v2535_v63, %v1762_v53  ;;  %v2576_v54 = vpop.f32.mrf.mxu0  ;;  %v2811_v53 = vrot.slane %v2802_v48, %v4448_v28  ;;  %v2819_v63 = vrot.slane %v2802_v48, %v1765_v56 }
 0x54a   :  { %v2537_v2 = vpop.f32.mrf.mxu1  ;;  %v2585_v6 = vrot.slane %v2575_v51, 1  ;;  %v2609_v7 = vrot.slane %v2575_v51, 7  ;;  %v2577_v9 = vadd.f32 %v2576_v54, %v2534_v1 }
 0x54b   :  { %v2538_v3 = vadd.f32 %v2537_v2, %v1766_v61  ;;  %v2578_v4 = vpop.f32.mrf.mxu0 }
 0x54c   :  { %v2579_v5 = vadd.f32 %v2578_v4, %v2536_v0  ;;  %v2586_v20 = vrot.slane %v2577_v9, 1  ;;  %v2610_v21 = vrot.slane %v2577_v9, 7 }
 0x54d   :  { %v2580_v8 = vpop.f32.mrf.mxu0 }
 0x54e   :  { %v2589_v10 = vrot.slane %v2579_v5, 1  ;;  %v2613_v11 = vrot.slane %v2579_v5, 7  ;;  %v2581_v12 = vadd.f32 %v2580_v8, %v2538_v3 }
 0x550   :  { %v2593_v55 = vsel %vm240_vm0, %v2585_v6, %v2589_v10  ;;  %v2597_v13 = vsel %vm240_vm0, %v2589_v10, %v2585_v6  ;;  %v2617_v14 = vsel %vm1584_vm4, %v2609_v7, %v2613_v11  ;;  %v2621_v15 = vsel %vm1584_vm4, %v2613_v11, %v2609_v7 }
 0x551   :  { %v2601_v16 = vsel %vm4463_vm6, -inf, %v2593_v55  ;;  %v2605_v17 = vsel %vm4467_vm7, -inf, %v2597_v13  ;;  %v2625_v18 = vsel %vm4463_vm6, -inf, %v2621_v15  ;;  %v2629_v19 = vsel %vm4467_vm7, -inf, %v2617_v14 }
 0x552   :  { %v2590_v22 = vrot.slane %v2581_v12, 1  ;;  %v2614_v23 = vrot.slane %v2581_v12, 7  ;;  %v2637_v24 = vmax.f32 %v2605_v17, %v2629_v19  ;;  %v2633_v30 = vmax.f32 %v2601_v16, %v2625_v18 }
 0x554   :  { %v2598_v25 = vsel %vm240_vm0, %v2590_v22, %v2586_v20  ;;  %v2618_v27 = vsel %vm1584_vm4, %v2610_v21, %v2614_v23  ;;  %v2594_v29 = vsel %vm240_vm0, %v2586_v20, %v2590_v22  ;;  %v2622_v34 = vsel %vm1584_vm4, %v2614_v23, %v2610_v21 }
 0x555   :  { %v2606_v31 = vsel %vm4467_vm7, -inf, %v2598_v25  ;;  %v2630_v32 = vsel %vm4467_vm7, -inf, %v2618_v27  ;;  %v2602_v33 = vsel %vm4463_vm6, -inf, %v2594_v29  ;;  %v2626_v36 = vsel %vm4463_vm6, -inf, %v2622_v34 }
 0x556   :  { %v2638_v35 = vmax.f32 %v2606_v31, %v2630_v32  ;;  %v2645_v38 = vmax.f32 %v2579_v5, %v2637_v24  ;;  %v2634_v39 = vmax.f32 %v2602_v33, %v2626_v36  ;;  %v2641_v42 = vmax.f32 %v2575_v51, %v2633_v30  ;;  %v3139_v5 = vld [vmem:[#allocation2] ss:$0 sm:$0xff] }
 0x558   :  { %v2646_v40 = vmax.f32 %v2581_v12, %v2638_v35  ;;  %v2642_v41 = vmax.f32 %v2577_v9, %v2634_v39  ;;  %v2653_v45 = vmax.f32 %v2645_v38, 0.0  ;;  %v2649_v46 = vmax.f32 %v2641_v42, 0.0 }
 0x55a   :  { %v2654_v44 = vmax.f32 %v2646_v40, 0.0  ;;  %v2650_v60 = vmax.f32 %v2642_v41, 0.0 }
 0x55c   :  { %2759 = vmatprep.subr.mxu0 %v2654_v44 }
 0x55d   :  { %2760 = vmatpush1.msra.mxu0 %v2653_v45 }
 0x55e   :  { %2761 = vmatprep.subr.mxu0 %v2650_v60 }
 0x55f   :  { %2762 = vmatpush1.msra.mxu0 %v2649_v46 }
 0x560   :  { %3138 = vmatmul.mubr.msk.f32.vlgmr.msra.gmra.mxu0 %vm2656_vm8, %v4750_v50  ;;  %v2815_v50 = vrot.slane %v2802_v48, %v1761_v52 }
 0x5e0   :  { %v2726_v47 = vpop.f32.mrf.mxu0 }
 0x5e1   :  { %v2824_v58 = vmul.f32 %v2807_v49, %v2726_v47 }
 0x5e2   :  { %v2728_v57 = vpop.f32.mrf.mxu0 }
 0x5e3   :  { %v2825_v61 = vmul.f32 %v2811_v53, %v2728_v57  ;;  %v2829_v43 = vsel %vm2828_vm9, %v2824_v58, 0.0 }
 0x5e5   :  { %v2830_v62 = vsel %vm2828_vm9, %v2825_v61, 0.0 }
 0x5e6   :  { %v2831_v54 = vadd.f32 %v2830_v62, %v2829_v43 }
 0x620   :  { %v2797_v51 = vpop.f32.mrf.mxu0 }
 0x621   :  { %v2826_v0 = vmul.f32 %v2815_v50, %v2797_v51 }
 0x622   :  { %v2799_v1 = vpop.f32.mrf.mxu0 }
 0x623   :  { %v2832_v2 = vsel %vm2828_vm9, %v2826_v0, 0.0  ;;  %v2827_v26 = vmul.f32 %v2819_v63, %v2799_v1 }
 0x624   :  { %v2833_v3 = vadd.f32 %v2832_v2, %v2831_v54 }
 0x625   :  { %v2834_v28 = vsel %vm2828_vm9, %v2827_v26, 0.0 }
 0x626   :  { %v2835_v4 = vadd.f32 %v2834_v28, %v2833_v3 }
 0x628   :  { %2836 = vadd.xlane.f32.xlu0 %v2835_v4 }
 0x6b1   :  { %v2837_v6 = vpop.xlane.xlu0 %2836 }
 0x6b2   :  { %v2845_v7 = vadd.f32 %v3139_v5, %v2837_v6 }
 0x6b4   :  { %v3140_v8 = vmul.f32 -1.442695, %v2845_v7 }
 0x6b6   :  { %3642 = vpow2.f32 %v3140_v8 }
 0x6c3   :  { %v3643_v52 = vpop.eup %3642 }
 0x6c4   :  { %v2849_v9 = vadd.f32 1.0, %v3643_v52 }
 0x6c6   :  { %3644 = vrcp.f32 %v2849_v9 }
 0x6d3   :  { %v3645_v37 = vpop.eup %3644 }
 0x6d4   :  { %2853 = vst.msk [vmem:[%s4826_s14] sm:$0x3] %vm2852_vm10, %v3645_v37 }

</bundles_post_ra>
